<compile_context>
chip_gen: v7x
topology: tpu7x:2x2x1
jax: 0.10.0
libtpu: 0.0.40
codegen_flags: <defaults>
</compile_context>

<pallas_src>
import functools

import jax
import jax.numpy as jnp
from jax.experimental import pallas as pl
from jax.experimental.pallas import tpu as pltpu


def _round_up(a, b):
    return (a + b - 1) // b * b


def lstm_model_kernel(x_ref, wih_ref, whh_ref, b_ref, gamma_ref, beta_ref,
                      wfc_ref, bfc_ref, out_ref,
                      gx_sc, h_sc, c_sc, *,
                      time_chunk, batch_p, hidden, hidden_p, unroll):
    Hp = hidden_p
    mm_dtype = whh_ref.dtype

    # ---- 0) First chunk: zero-init the carried LSTM state.
    @pl.when(pl.program_id(0) == 0)
    def _():
        h_sc[...] = jnp.zeros_like(h_sc)
        c_sc[...] = jnp.zeros_like(c_sc)

    # ---- 1) Input projection for the whole chunk in one MXU matmul
    #         (hoisted out of the recurrence).  Rows are (t_local, b) pairs.
    gx_sc[...] = (jnp.dot(x_ref[...], wih_ref[...],
                          preferred_element_type=jnp.float32)
                  + b_ref[...])                               # (Tc*Bp, 4Hp) f32

    # Loop-invariant values hoisted out of the loop (JAX does not CSE
    # broadcast_in_dim / iota).
    whh = whh_ref[...]                                        # (Hp, 4Hp)
    lane = jax.lax.broadcasted_iota(jnp.int32, (batch_p, 4 * Hp), 1)
    is_g_lane = (lane >= 2 * Hp) & (lane < 3 * Hp)            # PyTorch order i,f,g,o

    # ---- 2) Recurrence: only h_{t-1} @ W_hh^T stays inside the time loop.
    def step(t):
        row = pl.multiple_of(t * batch_p, batch_p)            # 8-sublane aligned
        gates = (gx_sc[pl.ds(row, batch_p), :]
                 + jnp.dot(h_sc[...].astype(mm_dtype), whh,
                           preferred_element_type=jnp.float32))   # (Bp, 4Hp) f32

        # Single EUP pass: sigmoid over the full 4Hp tile; tanh on the g block
        # recovered via tanh(x) = 2*sigmoid(2x) - 1 (pure VPU fix-up).
        pre = jnp.where(is_g_lane, gates * 2.0, gates)
        sig = jax.nn.sigmoid(pre)
        act = jnp.where(is_g_lane, sig * 2.0 - 1.0, sig)

        # Lane-aligned, full-vreg gate blocks (Hp is a multiple of 128).
        i_g = act[:, 0 * Hp:1 * Hp]
        f_g = act[:, 1 * Hp:2 * Hp]
        g_g = act[:, 2 * Hp:3 * Hp]
        o_g = act[:, 3 * Hp:4 * Hp]

        c_t = f_g * c_sc[...] + i_g * g_g
        h_t = o_g * jnp.tanh(c_t)
        c_sc[...] = c_t
        h_sc[...] = h_t
        # Reuse the consumed gx row's first Hp lanes to stash h_t
        # (no separate hall_sc scratch slab).
        gx_sc[pl.ds(row, batch_p), 0:Hp] = h_t

    steps_outer = time_chunk // unroll

    @pl.loop(0, steps_outer)
    def _(so):
        base = so * unroll
        for u in range(unroll):          # static partial unroll
            step(base + u)

    # ---- 3) Chunk epilogue: LayerNorm + Linear + Sigmoid, lane-dense store.
    h_all = gx_sc[:, 0:Hp]                                    # (Tc*Bp, Hp) f32
    inv_h = 1.0 / float(hidden)                               # true H, not Hp
    m1 = jnp.sum(h_all, axis=-1, keepdims=True) * inv_h
    m2 = jnp.sum(h_all * h_all, axis=-1, keepdims=True) * inv_h
    var = m2 - m1 * m1                                        # one-pass variance
    scale = gamma_ref[...] * jax.lax.rsqrt(var + 1e-5)        # gamma folded in
    h_ln = (h_all - m1) * scale + beta_ref[...]
    y = (jnp.dot(h_ln.astype(mm_dtype), wfc_ref[...],
                 preferred_element_type=jnp.float32) + bfc_ref[...])
    out_ref[...] = jax.nn.sigmoid(y).astype(out_ref.dtype)    # (Tc*Bp, Op) unmasked vst


@functools.partial(jax.jit, static_argnames=("mm_dtype", "time_chunk"))
def lstm_model_forward(x, params, *, mm_dtype=jnp.bfloat16, time_chunk=4):
    """x: (T, B, I) float32.  Returns (T, B, O) float32.

    mm_dtype controls only the MXU operand dtype (weights / x / h); accumulation
    and all elementwise math are f32 (safe on v5e/v6e/v7x)."""
    T, B, I = x.shape
    H = params["w_hh"].shape[1]
    O = params["w_fc"].shape[0]

    Bp = max(8, _round_up(B, 8))          # full f32 sublane tile
    Hp = max(128, _round_up(H, 128))      # lane-aligned gate blocks
    Op = max(128, _round_up(O, 128))      # lane-dense FC output
    Tc = max(1, int(time_chunk))
    Tp = _round_up(T, Tc)
    n_chunks = Tp // Tc
    unroll = next(u for u in (8, 4, 2, 1) if Tc % u == 0)

    # Pad time & batch, cast MXU operand in the wrapper, fold (Tp, Bp) rows.
    x_p = (jnp.zeros((Tp, Bp, I), mm_dtype)
           .at[:T, :B, :].set(x.astype(mm_dtype)))
    x2d = x_p.reshape(Tp * Bp, I)

    def pad_gate_cols(w):                 # (rows, 4H) -> (rows, 4Hp), gate-block aligned
        rows = w.shape[0]
        out = jnp.zeros((rows, 4 * Hp), w.dtype)
        for k in range(4):
            out = out.at[:, k * Hp:k * Hp + H].set(w[:, k * H:(k + 1) * H])
        return out

    wih_t = pad_gate_cols(params["w_ih"].T.astype(mm_dtype))            # (I, 4Hp)
    whh_t = (jnp.zeros((Hp, 4 * Hp), mm_dtype)
             .at[:H, :].set(pad_gate_cols(params["w_hh"].T.astype(mm_dtype))))
    b = pad_gate_cols((params["b_ih"] + params["b_hh"])
                      .astype(jnp.float32)[None, :])                    # (1, 4Hp)
    gamma = jnp.zeros((1, Hp), jnp.float32).at[:, :H].set(
        params["ln_gamma"][None, :].astype(jnp.float32))
    beta = jnp.zeros((1, Hp), jnp.float32).at[:, :H].set(
        params["ln_beta"][None, :].astype(jnp.float32))
    wfc_t = jnp.zeros((Hp, Op), mm_dtype).at[:H, :O].set(
        params["w_fc"].T.astype(mm_dtype))                              # (Hp, Op)
    bfc = jnp.zeros((1, Op), jnp.float32).at[:, :O].set(
        params["b_fc"][None, :].astype(jnp.float32))                    # (1, Op)

    # Weight / bias blocks: constant index_map -> fetched once, resident across chunks.
    resident = lambda a: pl.BlockSpec(a.shape, lambda i: (0,) * a.ndim)

    # Explicit VMEM budget with headroom (clamped to v7x-physical-safe 64 MiB).
    mm_b = jnp.dtype(mm_dtype).itemsize
    est = (2 * Tc * Bp * I * mm_b                        # x block (double buffered)
           + 2 * Tc * Bp * Op * 4                        # out block (double buffered)
           + 2 * (I * 4 * Hp + Hp * 4 * Hp + Hp * Op) * mm_b   # weights
           + 2 * (4 * Hp + 2 * Hp + Op) * 4              # biases / gamma / beta
           + Tc * Bp * 4 * Hp * 4                        # gx scratch
           + 2 * Bp * Hp * 4)                            # h, c
    vmem_limit = int(min(64 * 1024 * 1024, max(32 * 1024 * 1024, est * 2)))

    out2d = pl.pallas_call(
        functools.partial(lstm_model_kernel, time_chunk=Tc, batch_p=Bp,
                          hidden=H, hidden_p=Hp, unroll=unroll),
        out_shape=jax.ShapeDtypeStruct((Tp * Bp, Op), jnp.float32),
        grid_spec=pltpu.PrefetchScalarGridSpec(
            num_scalar_prefetch=0,
            grid=(n_chunks,),
            in_specs=[
                pl.BlockSpec((Tc * Bp, I), lambda i: (i, 0)),   # x chunk (pipelined)
                resident(wih_t),    # (I, 4Hp)
                resident(whh_t),    # (Hp, 4Hp)
                resident(b),        # (1, 4Hp)
                resident(gamma),    # (1, Hp)
                resident(beta),     # (1, Hp)
                resident(wfc_t),    # (Hp, Op)
                resident(bfc),      # (1, Op)
            ],
            out_specs=pl.BlockSpec((Tc * Bp, Op), lambda i: (i, 0)),
            scratch_shapes=[
                pltpu.VMEM((Tc * Bp, 4 * Hp), jnp.float32),     # gx (h_t stashed back)
                pltpu.VMEM((Bp, Hp), jnp.float32),              # h (carried)
                pltpu.VMEM((Bp, Hp), jnp.float32),              # c (carried)
            ],
        ),
        compiler_params=pltpu.CompilerParams(
            dimension_semantics=("arbitrary",),     # recurrence -> sequential chunks
            vmem_limit_bytes=vmem_limit),
    )(x2d, wih_t, whh_t, b, gamma, beta, wfc_t, bfc)

    return out2d.reshape(Tp, Bp, Op)[:T, :B, :O]


def lstm_model_reference(x, params):
    """Pure-JAX reference (PyTorch eval semantics) for correctness checking."""
    wih, whh = params["w_ih"], params["w_hh"]
    bias = params["b_ih"] + params["b_hh"]
    H = whh.shape[1]
    hi = jax.lax.Precision.HIGHEST

    def step(carry, x_t):
        h, c = carry
        gates = (jnp.dot(x_t, wih.T, precision=hi)
                 + jnp.dot(h, whh.T, precision=hi) + bias)
        i = jax.nn.sigmoid(gates[:, 0 * H:1 * H])
        f = jax.nn.sigmoid(gates[:, 1 * H:2 * H])
        g = jnp.tanh(gates[:, 2 * H:3 * H])
        o = jax.nn.sigmoid(gates[:, 3 * H:4 * H])
        c = f * c + i * g
        h = o * jnp.tanh(c)
        return (h, c), h

    B = x.shape[1]
    h0 = jnp.zeros((B, H), jnp.float32)
    _, hs = jax.lax.scan(step, (h0, h0), x)
    mean = hs.mean(-1, keepdims=True)
    var = jnp.square(hs - mean).mean(-1, keepdims=True)
    ln = ((hs - mean) * jax.lax.rsqrt(var + 1e-5)
          * params["ln_gamma"] + params["ln_beta"])
    y = jnp.dot(ln, params["w_fc"].T, precision=hi) + params["b_fc"]
    return jax.nn.sigmoid(y)


def init_params(key, input_size, hidden_size, output_size):
    # PyTorch-style uniform(-1/sqrt(H), 1/sqrt(H)) init, deterministic.
    ks = jax.random.split(key, 8)
    k_lstm = 1.0 / jnp.sqrt(hidden_size)
    k_fc = 1.0 / jnp.sqrt(hidden_size)
    u = lambda k, shape, s: jax.random.uniform(k, shape, jnp.float32, -s, s)
    return {
        "w_ih": u(ks[0], (4 * hidden_size, input_size), k_lstm),
        "w_hh": u(ks[1], (4 * hidden_size, hidden_size), k_lstm),
        "b_ih": u(ks[2], (4 * hidden_size,), k_lstm),
        "b_hh": u(ks[3], (4 * hidden_size,), k_lstm),
        "ln_gamma": jnp.ones((hidden_size,), jnp.float32),
        "ln_beta": jnp.zeros((hidden_size,), jnp.float32),
        "w_fc": u(ks[4], (output_size, hidden_size), k_fc),
        "b_fc": u(ks[5], (output_size,), k_fc),
    }


if __name__ == "__main__":
    input_size, hidden_size, output_size = 16, 32, 8
    T, B = 8, 4

    key = jax.random.PRNGKey(0)
    k_x, k_p = jax.random.split(key)
    x = jax.random.normal(k_x, (T, B, input_size), jnp.float32)
    params = init_params(k_p, input_size, hidden_size, output_size)

    ref = lstm_model_reference(x, params)

    # Default path: bf16 MXU operands (f32 accumulation / elementwise).
    out_bf16 = lstm_model_forward(x, params)            # time_chunk=4 -> grid=(2,)
    jax.block_until_ready(out_bf16)
    assert out_bf16.shape == (T, B, output_size)
    err_bf16 = float(jnp.max(jnp.abs(out_bf16 - ref)))
    assert err_bf16 < 3e-2, f"bf16 mismatch vs reference: {err_bf16}"

    # f32 MXU operands for tight PyTorch parity.
    out_f32 = lstm_model_forward(x, params, mm_dtype=jnp.float32)
    jax.block_until_ready(out_f32)
    err_f32 = float(jnp.max(jnp.abs(out_f32 - ref)))
    assert err_f32 < 2e-3, f"f32 mismatch vs reference: {err_f32}"

    print("KERNEL_OK")
</pallas_src>

<mosaic_0001>
module attributes {stable_mosaic.version = 11 : i64} {
  func.func @lstm_model_kernel(%arg0: i32, %arg1: memref<32x16xbf16, #tpu.memory_space<vmem>>, %arg2: memref<16x512xbf16, #tpu.memory_space<vmem>>, %arg3: memref<128x512xbf16, #tpu.memory_space<vmem>>, %arg4: memref<1x512xf32, #tpu.memory_space<vmem>>, %arg5: memref<1x128xf32, #tpu.memory_space<vmem>>, %arg6: memref<1x128xf32, #tpu.memory_space<vmem>>, %arg7: memref<128x128xbf16, #tpu.memory_space<vmem>>, %arg8: memref<1x128xf32, #tpu.memory_space<vmem>>, %arg9: memref<32x128xf32, #tpu.memory_space<vmem>>, %arg10: memref<32x512xf32, #tpu.memory_space<vmem>>, %arg11: memref<8x128xf32, #tpu.memory_space<vmem>>, %arg12: memref<8x128xf32, #tpu.memory_space<vmem>>) attributes {dimension_semantics = [#tpu.dimension_semantics<arbitrary>], iteration_bounds = array<i64: 2>, scalar_prefetch = 0 : i64, scratch_operands = 3 : i64, tpu.core_type = #tpu.core_type<tc>, window_params = [{transform_indices = @transform_0, window_bounds = array<i64: 32, 16>}, {pipeline_mode = #tpu.pipeline_mode<synchronous>, transform_indices = @transform_1, window_bounds = array<i64: 16, 512>}, {pipeline_mode = #tpu.pipeline_mode<synchronous>, transform_indices = @transform_2, window_bounds = array<i64: 128, 512>}, {pipeline_mode = #tpu.pipeline_mode<synchronous>, transform_indices = @transform_3, window_bounds = array<i64: 1, 512>}, {pipeline_mode = #tpu.pipeline_mode<synchronous>, transform_indices = @transform_4, window_bounds = array<i64: 1, 128>}, {pipeline_mode = #tpu.pipeline_mode<synchronous>, transform_indices = @transform_5, window_bounds = array<i64: 1, 128>}, {pipeline_mode = #tpu.pipeline_mode<synchronous>, transform_indices = @transform_6, window_bounds = array<i64: 128, 128>}, {pipeline_mode = #tpu.pipeline_mode<synchronous>, transform_indices = @transform_7, window_bounds = array<i64: 1, 128>}, {transform_indices = @transform_8, window_bounds = array<i64: 32, 128>}]} {
    %c0_i32 = arith.constant 0 : i32
    %0 = arith.cmpi eq, %arg0, %c0_i32 : i32
    %1 = arith.extui %0 : i1 to i32
    %c0_i32_0 = arith.constant 0 : i32
    %2 = arith.cmpi ne, %1, %c0_i32_0 : i32
    scf.if %2 {
      %cst_97 = arith.constant 0.000000e+00 : f32
      %201 = vector.broadcast %cst_97 : f32 to vector<8x128xf32>
      %c0_98 = arith.constant 0 : index
      %c0_99 = arith.constant 0 : index
      %202 = vector.load %arg11[%c0_98, %c0_99] : memref<8x128xf32, #tpu.memory_space<vmem>>, vector<8x128xf32>
      tpu.vector_store %arg11[%c0_98, %c0_99], %201 {strides = array<i32>} : memref<8x128xf32, #tpu.memory_space<vmem>>, vector<8x128xf32>,
      %cst_100 = arith.constant 0.000000e+00 : f32
      %203 = vector.broadcast %cst_100 : f32 to vector<8x128xf32>
      %c0_101 = arith.constant 0 : index
      %c0_102 = arith.constant 0 : index
      %204 = vector.load %arg12[%c0_101, %c0_102] : memref<8x128xf32, #tpu.memory_space<vmem>>, vector<8x128xf32>
      tpu.vector_store %arg12[%c0_101, %c0_102], %203 {strides = array<i32>} : memref<8x128xf32, #tpu.memory_space<vmem>>, vector<8x128xf32>,
    } else {
    }
    %c0 = arith.constant 0 : index
    %c0_1 = arith.constant 0 : index
    %3 = vector.load %arg1[%c0, %c0_1] : memref<32x16xbf16, #tpu.memory_space<vmem>>, vector<32x16xbf16>
    %c0_2 = arith.constant 0 : index
    %c0_3 = arith.constant 0 : index
    %4 = vector.load %arg2[%c0_2, %c0_3] : memref<16x512xbf16, #tpu.memory_space<vmem>>, vector<16x512xbf16>
    %cst = arith.constant dense<0.000000e+00> : vector<32x512xf32>
    %5 = tpu.matmul %3, %4, %cst {dimension_numbers = #tpu.dot_dimension_numbers<[1], [0], [0], [1], [0, 0, 1, 1], [], []>} : vector<32x16xbf16>, vector<16x512xbf16>, vector<32x512xf32> -> vector<32x512xf32>
    %c0_4 = arith.constant 0 : index
    %c0_5 = arith.constant 0 : index
    %6 = vector.load %arg4[%c0_4, %c0_5] : memref<1x512xf32, #tpu.memory_space<vmem>>, vector<1x512xf32>
    %7 = vector.broadcast %6 : vector<1x512xf32> to vector<32x512xf32>
    %8 = arith.addf %5, %7 : vector<32x512xf32>
    %c0_6 = arith.constant 0 : index
    %c0_7 = arith.constant 0 : index
    %9 = vector.load %arg10[%c0_6, %c0_7] : memref<32x512xf32, #tpu.memory_space<vmem>>, vector<32x512xf32>
    tpu.vector_store %arg10[%c0_6, %c0_7], %8 {strides = array<i32>} : memref<32x512xf32, #tpu.memory_space<vmem>>, vector<32x512xf32>,
    %c0_8 = arith.constant 0 : index
    %c0_9 = arith.constant 0 : index
    %10 = vector.load %arg3[%c0_8, %c0_9] : memref<128x512xbf16, #tpu.memory_space<vmem>>, vector<128x512xbf16>
    %11 = tpu.iota {dimensions = array<i32: 1>} : vector<8x512xi32>
    %c256_i32 = arith.constant 256 : i32
    %12 = vector.broadcast %c256_i32 : i32 to vector<8x512xi32>
    %13 = arith.cmpi sge, %11, %12 : vector<8x512xi32>
    %c384_i32 = arith.constant 384 : i32
    %14 = vector.broadcast %c384_i32 : i32 to vector<8x512xi32>
    %15 = arith.cmpi slt, %11, %14 : vector<8x512xi32>
    %16 = arith.andi %13, %15 : vector<8x512xi1>
    %c0_i32_10 = arith.constant 0 : i32
    %c1_i32 = arith.constant 1 : i32
    %17 = arith.muli %c0_i32_10, %c1_i32 : i32
    %c0_i32_11 = arith.constant 0 : i32
    %18 = arith.addi %c0_i32_11, %17 : i32
    %c4_i32 = arith.constant 4 : i32
    %19 = arith.muli %18, %c4_i32 : i32
    %c0_i32_12 = arith.constant 0 : i32
    %20 = arith.addi %19, %c0_i32_12 : i32
    %c8_i32 = arith.constant 8 : i32
    %21 = arith.muli %20, %c8_i32 : i32
    %22 = tpu.assume_multiple %21, 8 : i32
    %23 = arith.index_cast %22 : i32 to index
    %c0_13 = arith.constant 0 : index
    %24 = vector.load %arg10[%23, %c0_13] : memref<32x512xf32, #tpu.memory_space<vmem>>, vector<8x512xf32>
    %c0_14 = arith.constant 0 : index
    %c0_15 = arith.constant 0 : index
    %25 = vector.load %arg11[%c0_14, %c0_15] : memref<8x128xf32, #tpu.memory_space<vmem>>, vector<8x128xf32>
    %26 = arith.truncf %25 : vector<8x128xf32> to vector<8x128xbf16>
    %cst_16 = arith.constant dense<0.000000e+00> : vector<8x512xf32>
    %27 = tpu.matmul %26, %10, %cst_16 {dimension_numbers = #tpu.dot_dimension_numbers<[1], [0], [0], [1], [0, 0, 1, 1], [], []>} : vector<8x128xbf16>, vector<128x512xbf16>, vector<8x512xf32> -> vector<8x512xf32>
    %28 = arith.addf %24, %27 : vector<8x512xf32>
    %cst_17 = arith.constant 2.000000e+00 : f32
    %29 = vector.broadcast %cst_17 : f32 to vector<8x512xf32>
    %30 = arith.mulf %28, %29 : vector<8x512xf32>
    %31 = arith.select %16, %30, %28 : vector<8x512xi1>, vector<8x512xf32>
    %32 = arith.negf %31 : vector<8x512xf32>
    %33 = math.exp %32 : vector<8x512xf32>
    %cst_18 = arith.constant 1.000000e+00 : f32
    %34 = vector.broadcast %cst_18 : f32 to vector<8x512xf32>
    %35 = arith.addf %34, %33 : vector<8x512xf32>
    %36 = arith.divf %34, %35 : vector<8x512xf32>
    %cst_19 = arith.constant 2.000000e+00 : f32
    %37 = vector.broadcast %cst_19 : f32 to vector<8x512xf32>
    %38 = arith.mulf %36, %37 : vector<8x512xf32>
    %cst_20 = arith.constant 1.000000e+00 : f32
    %39 = vector.broadcast %cst_20 : f32 to vector<8x512xf32>
    %40 = arith.subf %38, %39 : vector<8x512xf32>
    %41 = arith.select %16, %40, %36 : vector<8x512xi1>, vector<8x512xf32>
    %42 = vector.extract_strided_slice %41 {offsets = [0, 0], sizes = [8, 128], strides = [1, 1]} : vector<8x512xf32> to vector<8x128xf32>
    %43 = vector.extract_strided_slice %41 {offsets = [0, 128], sizes = [8, 128], strides = [1, 1]} : vector<8x512xf32> to vector<8x128xf32>
    %44 = vector.extract_strided_slice %41 {offsets = [0, 256], sizes = [8, 128], strides = [1, 1]} : vector<8x512xf32> to vector<8x128xf32>
    %45 = vector.extract_strided_slice %41 {offsets = [0, 384], sizes = [8, 128], strides = [1, 1]} : vector<8x512xf32> to vector<8x128xf32>
    %c0_21 = arith.constant 0 : index
    %c0_22 = arith.constant 0 : index
    %46 = vector.load %arg12[%c0_21, %c0_22] : memref<8x128xf32, #tpu.memory_space<vmem>>, vector<8x128xf32>
    %47 = arith.mulf %43, %46 : vector<8x128xf32>
    %48 = arith.mulf %42, %44 : vector<8x128xf32>
    %49 = arith.addf %47, %48 : vector<8x128xf32>
    %50 = math.tanh %49 : vector<8x128xf32>
    %51 = arith.mulf %45, %50 : vector<8x128xf32>
    %c0_23 = arith.constant 0 : index
    %c0_24 = arith.constant 0 : index
    %52 = vector.load %arg12[%c0_23, %c0_24] : memref<8x128xf32, #tpu.memory_space<vmem>>, vector<8x128xf32>
    tpu.vector_store %arg12[%c0_23, %c0_24], %49 {strides = array<i32>} : memref<8x128xf32, #tpu.memory_space<vmem>>, vector<8x128xf32>,
    %c0_25 = arith.constant 0 : index
    %c0_26 = arith.constant 0 : index
    %53 = vector.load %arg11[%c0_25, %c0_26] : memref<8x128xf32, #tpu.memory_space<vmem>>, vector<8x128xf32>
    tpu.vector_store %arg11[%c0_25, %c0_26], %51 {strides = array<i32>} : memref<8x128xf32, #tpu.memory_space<vmem>>, vector<8x128xf32>,
    %54 = arith.index_cast %22 : i32 to index
    %c0_27 = arith.constant 0 : index
    %55 = vector.load %arg10[%54, %c0_27] : memref<32x512xf32, #tpu.memory_space<vmem>>, vector<8x128xf32>
    tpu.vector_store %arg10[%54, %c0_27], %51 {strides = array<i32>} : memref<32x512xf32, #tpu.memory_space<vmem>>, vector<8x128xf32>,
    %c1_i32_28 = arith.constant 1 : i32
    %56 = arith.addi %19, %c1_i32_28 : i32
    %c8_i32_29 = arith.constant 8 : i32
    %57 = arith.muli %56, %c8_i32_29 : i32
    %58 = tpu.assume_multiple %57, 8 : i32
    %59 = arith.index_cast %58 : i32 to index
    %c0_30 = arith.constant 0 : index
    %60 = vector.load %arg10[%59, %c0_30] : memref<32x512xf32, #tpu.memory_space<vmem>>, vector<8x512xf32>
    %c0_31 = arith.constant 0 : index
    %c0_32 = arith.constant 0 : index
    %61 = vector.load %arg11[%c0_31, %c0_32] : memref<8x128xf32, #tpu.memory_space<vmem>>, vector<8x128xf32>
    %62 = arith.truncf %61 : vector<8x128xf32> to vector<8x128xbf16>
    %cst_33 = arith.constant dense<0.000000e+00> : vector<8x512xf32>
    %63 = tpu.matmul %62, %10, %cst_33 {dimension_numbers = #tpu.dot_dimension_numbers<[1], [0], [0], [1], [0, 0, 1, 1], [], []>} : vector<8x128xbf16>, vector<128x512xbf16>, vector<8x512xf32> -> vector<8x512xf32>
    %64 = arith.addf %60, %63 : vector<8x512xf32>
    %cst_34 = arith.constant 2.000000e+00 : f32
    %65 = vector.broadcast %cst_34 : f32 to vector<8x512xf32>
    %66 = arith.mulf %64, %65 : vector<8x512xf32>
    %67 = arith.select %16, %66, %64 : vector<8x512xi1>, vector<8x512xf32>
    %68 = arith.negf %67 : vector<8x512xf32>
    %69 = math.exp %68 : vector<8x512xf32>
    %cst_35 = arith.constant 1.000000e+00 : f32
    %70 = vector.broadcast %cst_35 : f32 to vector<8x512xf32>
    %71 = arith.addf %70, %69 : vector<8x512xf32>
    %72 = arith.divf %70, %71 : vector<8x512xf32>
    %cst_36 = arith.constant 2.000000e+00 : f32
    %73 = vector.broadcast %cst_36 : f32 to vector<8x512xf32>
    %74 = arith.mulf %72, %73 : vector<8x512xf32>
    %cst_37 = arith.constant 1.000000e+00 : f32
    %75 = vector.broadcast %cst_37 : f32 to vector<8x512xf32>
    %76 = arith.subf %74, %75 : vector<8x512xf32>
    %77 = arith.select %16, %76, %72 : vector<8x512xi1>, vector<8x512xf32>
    %78 = vector.extract_strided_slice %77 {offsets = [0, 0], sizes = [8, 128], strides = [1, 1]} : vector<8x512xf32> to vector<8x128xf32>
    %79 = vector.extract_strided_slice %77 {offsets = [0, 128], sizes = [8, 128], strides = [1, 1]} : vector<8x512xf32> to vector<8x128xf32>
    %80 = vector.extract_strided_slice %77 {offsets = [0, 256], sizes = [8, 128], strides = [1, 1]} : vector<8x512xf32> to vector<8x128xf32>
    %81 = vector.extract_strided_slice %77 {offsets = [0, 384], sizes = [8, 128], strides = [1, 1]} : vector<8x512xf32> to vector<8x128xf32>
    %c0_38 = arith.constant 0 : index
    %c0_39 = arith.constant 0 : index
    %82 = vector.load %arg12[%c0_38, %c0_39] : memref<8x128xf32, #tpu.memory_space<vmem>>, vector<8x128xf32>
    %83 = arith.mulf %79, %82 : vector<8x128xf32>
    %84 = arith.mulf %78, %80 : vector<8x128xf32>
    %85 = arith.addf %83, %84 : vector<8x128xf32>
    %86 = math.tanh %85 : vector<8x128xf32>
    %87 = arith.mulf %81, %86 : vector<8x128xf32>
    %c0_40 = arith.constant 0 : index
    %c0_41 = arith.constant 0 : index
    %88 = vector.load %arg12[%c0_40, %c0_41] : memref<8x128xf32, #tpu.memory_space<vmem>>, vector<8x128xf32>
    tpu.vector_store %arg12[%c0_40, %c0_41], %85 {strides = array<i32>} : memref<8x128xf32, #tpu.memory_space<vmem>>, vector<8x128xf32>,
    %c0_42 = arith.constant 0 : index
    %c0_43 = arith.constant 0 : index
    %89 = vector.load %arg11[%c0_42, %c0_43] : memref<8x128xf32, #tpu.memory_space<vmem>>, vector<8x128xf32>
    tpu.vector_store %arg11[%c0_42, %c0_43], %87 {strides = array<i32>} : memref<8x128xf32, #tpu.memory_space<vmem>>, vector<8x128xf32>,
    %90 = arith.index_cast %58 : i32 to index
    %c0_44 = arith.constant 0 : index
    %91 = vector.load %arg10[%90, %c0_44] : memref<32x512xf32, #tpu.memory_space<vmem>>, vector<8x128xf32>
    tpu.vector_store %arg10[%90, %c0_44], %87 {strides = array<i32>} : memref<32x512xf32, #tpu.memory_space<vmem>>, vector<8x128xf32>,
    %c2_i32 = arith.constant 2 : i32
    %92 = arith.addi %19, %c2_i32 : i32
    %c8_i32_45 = arith.constant 8 : i32
    %93 = arith.muli %92, %c8_i32_45 : i32
    %94 = tpu.assume_multiple %93, 8 : i32
    %95 = arith.index_cast %94 : i32 to index
    %c0_46 = arith.constant 0 : index
    %96 = vector.load %arg10[%95, %c0_46] : memref<32x512xf32, #tpu.memory_space<vmem>>, vector<8x512xf32>
    %c0_47 = arith.constant 0 : index
    %c0_48 = arith.constant 0 : index
    %97 = vector.load %arg11[%c0_47, %c0_48] : memref<8x128xf32, #tpu.memory_space<vmem>>, vector<8x128xf32>
    %98 = arith.truncf %97 : vector<8x128xf32> to vector<8x128xbf16>
    %cst_49 = arith.constant dense<0.000000e+00> : vector<8x512xf32>
    %99 = tpu.matmul %98, %10, %cst_49 {dimension_numbers = #tpu.dot_dimension_numbers<[1], [0], [0], [1], [0, 0, 1, 1], [], []>} : vector<8x128xbf16>, vector<128x512xbf16>, vector<8x512xf32> -> vector<8x512xf32>
    %100 = arith.addf %96, %99 : vector<8x512xf32>
    %cst_50 = arith.constant 2.000000e+00 : f32
    %101 = vector.broadcast %cst_50 : f32 to vector<8x512xf32>
    %102 = arith.mulf %100, %101 : vector<8x512xf32>
    %103 = arith.select %16, %102, %100 : vector<8x512xi1>, vector<8x512xf32>
    %104 = arith.negf %103 : vector<8x512xf32>
    %105 = math.exp %104 : vector<8x512xf32>
    %cst_51 = arith.constant 1.000000e+00 : f32
    %106 = vector.broadcast %cst_51 : f32 to vector<8x512xf32>
    %107 = arith.addf %106, %105 : vector<8x512xf32>
    %108 = arith.divf %106, %107 : vector<8x512xf32>
    %cst_52 = arith.constant 2.000000e+00 : f32
    %109 = vector.broadcast %cst_52 : f32 to vector<8x512xf32>
    %110 = arith.mulf %108, %109 : vector<8x512xf32>
    %cst_53 = arith.constant 1.000000e+00 : f32
    %111 = vector.broadcast %cst_53 : f32 to vector<8x512xf32>
    %112 = arith.subf %110, %111 : vector<8x512xf32>
    %113 = arith.select %16, %112, %108 : vector<8x512xi1>, vector<8x512xf32>
    %114 = vector.extract_strided_slice %113 {offsets = [0, 0], sizes = [8, 128], strides = [1, 1]} : vector<8x512xf32> to vector<8x128xf32>
    %115 = vector.extract_strided_slice %113 {offsets = [0, 128], sizes = [8, 128], strides = [1, 1]} : vector<8x512xf32> to vector<8x128xf32>
    %116 = vector.extract_strided_slice %113 {offsets = [0, 256], sizes = [8, 128], strides = [1, 1]} : vector<8x512xf32> to vector<8x128xf32>
    %117 = vector.extract_strided_slice %113 {offsets = [0, 384], sizes = [8, 128], strides = [1, 1]} : vector<8x512xf32> to vector<8x128xf32>
    %c0_54 = arith.constant 0 : index
    %c0_55 = arith.constant 0 : index
    %118 = vector.load %arg12[%c0_54, %c0_55] : memref<8x128xf32, #tpu.memory_space<vmem>>, vector<8x128xf32>
    %119 = arith.mulf %115, %118 : vector<8x128xf32>
    %120 = arith.mulf %114, %116 : vector<8x128xf32>
    %121 = arith.addf %119, %120 : vector<8x128xf32>
    %122 = math.tanh %121 : vector<8x128xf32>
    %123 = arith.mulf %117, %122 : vector<8x128xf32>
    %c0_56 = arith.constant 0 : index
    %c0_57 = arith.constant 0 : index
    %124 = vector.load %arg12[%c0_56, %c0_57] : memref<8x128xf32, #tpu.memory_space<vmem>>, vector<8x128xf32>
    tpu.vector_store %arg12[%c0_56, %c0_57], %121 {strides = array<i32>} : memref<8x128xf32, #tpu.memory_space<vmem>>, vector<8x128xf32>,
    %c0_58 = arith.constant 0 : index
    %c0_59 = arith.constant 0 : index
    %125 = vector.load %arg11[%c0_58, %c0_59] : memref<8x128xf32, #tpu.memory_space<vmem>>, vector<8x128xf32>
    tpu.vector_store %arg11[%c0_58, %c0_59], %123 {strides = array<i32>} : memref<8x128xf32, #tpu.memory_space<vmem>>, vector<8x128xf32>,
    %126 = arith.index_cast %94 : i32 to index
    %c0_60 = arith.constant 0 : index
    %127 = vector.load %arg10[%126, %c0_60] : memref<32x512xf32, #tpu.memory_space<vmem>>, vector<8x128xf32>
    tpu.vector_store %arg10[%126, %c0_60], %123 {strides = array<i32>} : memref<32x512xf32, #tpu.memory_space<vmem>>, vector<8x128xf32>,
    %c3_i32 = arith.constant 3 : i32
    %128 = arith.addi %19, %c3_i32 : i32
    %c8_i32_61 = arith.constant 8 : i32
    %129 = arith.muli %128, %c8_i32_61 : i32
    %130 = tpu.assume_multiple %129, 8 : i32
    %131 = arith.index_cast %130 : i32 to index
    %c0_62 = arith.constant 0 : index
    %132 = vector.load %arg10[%131, %c0_62] : memref<32x512xf32, #tpu.memory_space<vmem>>, vector<8x512xf32>
    %c0_63 = arith.constant 0 : index
    %c0_64 = arith.constant 0 : index
    %133 = vector.load %arg11[%c0_63, %c0_64] : memref<8x128xf32, #tpu.memory_space<vmem>>, vector<8x128xf32>
    %134 = arith.truncf %133 : vector<8x128xf32> to vector<8x128xbf16>
    %cst_65 = arith.constant dense<0.000000e+00> : vector<8x512xf32>
    %135 = tpu.matmul %134, %10, %cst_65 {dimension_numbers = #tpu.dot_dimension_numbers<[1], [0], [0], [1], [0, 0, 1, 1], [], []>} : vector<8x128xbf16>, vector<128x512xbf16>, vector<8x512xf32> -> vector<8x512xf32>
    %136 = arith.addf %132, %135 : vector<8x512xf32>
    %cst_66 = arith.constant 2.000000e+00 : f32
    %137 = vector.broadcast %cst_66 : f32 to vector<8x512xf32>
    %138 = arith.mulf %136, %137 : vector<8x512xf32>
    %139 = arith.select %16, %138, %136 : vector<8x512xi1>, vector<8x512xf32>
    %140 = arith.negf %139 : vector<8x512xf32>
    %141 = math.exp %140 : vector<8x512xf32>
    %cst_67 = arith.constant 1.000000e+00 : f32
    %142 = vector.broadcast %cst_67 : f32 to vector<8x512xf32>
    %143 = arith.addf %142, %141 : vector<8x512xf32>
    %144 = arith.divf %142, %143 : vector<8x512xf32>
    %cst_68 = arith.constant 2.000000e+00 : f32
    %145 = vector.broadcast %cst_68 : f32 to vector<8x512xf32>
    %146 = arith.mulf %144, %145 : vector<8x512xf32>
    %cst_69 = arith.constant 1.000000e+00 : f32
    %147 = vector.broadcast %cst_69 : f32 to vector<8x512xf32>
    %148 = arith.subf %146, %147 : vector<8x512xf32>
    %149 = arith.select %16, %148, %144 : vector<8x512xi1>, vector<8x512xf32>
    %150 = vector.extract_strided_slice %149 {offsets = [0, 0], sizes = [8, 128], strides = [1, 1]} : vector<8x512xf32> to vector<8x128xf32>
    %151 = vector.extract_strided_slice %149 {offsets = [0, 128], sizes = [8, 128], strides = [1, 1]} : vector<8x512xf32> to vector<8x128xf32>
    %152 = vector.extract_strided_slice %149 {offsets = [0, 256], sizes = [8, 128], strides = [1, 1]} : vector<8x512xf32> to vector<8x128xf32>
    %153 = vector.extract_strided_slice %149 {offsets = [0, 384], sizes = [8, 128], strides = [1, 1]} : vector<8x512xf32> to vector<8x128xf32>
    %c0_70 = arith.constant 0 : index
    %c0_71 = arith.constant 0 : index
    %154 = vector.load %arg12[%c0_70, %c0_71] : memref<8x128xf32, #tpu.memory_space<vmem>>, vector<8x128xf32>
    %155 = arith.mulf %151, %154 : vector<8x128xf32>
    %156 = arith.mulf %150, %152 : vector<8x128xf32>
    %157 = arith.addf %155, %156 : vector<8x128xf32>
    %158 = math.tanh %157 : vector<8x128xf32>
    %159 = arith.mulf %153, %158 : vector<8x128xf32>
    %c0_72 = arith.constant 0 : index
    %c0_73 = arith.constant 0 : index
    %160 = vector.load %arg12[%c0_72, %c0_73] : memref<8x128xf32, #tpu.memory_space<vmem>>, vector<8x128xf32>
    tpu.vector_store %arg12[%c0_72, %c0_73], %157 {strides = array<i32>} : memref<8x128xf32, #tpu.memory_space<vmem>>, vector<8x128xf32>,
    %c0_74 = arith.constant 0 : index
    %c0_75 = arith.constant 0 : index
    %161 = vector.load %arg11[%c0_74, %c0_75] : memref<8x128xf32, #tpu.memory_space<vmem>>, vector<8x128xf32>
    tpu.vector_store %arg11[%c0_74, %c0_75], %159 {strides = array<i32>} : memref<8x128xf32, #tpu.memory_space<vmem>>, vector<8x128xf32>,
    %162 = arith.index_cast %130 : i32 to index
    %c0_76 = arith.constant 0 : index
    %163 = vector.load %arg10[%162, %c0_76] : memref<32x512xf32, #tpu.memory_space<vmem>>, vector<8x128xf32>
    tpu.vector_store %arg10[%162, %c0_76], %159 {strides = array<i32>} : memref<32x512xf32, #tpu.memory_space<vmem>>, vector<8x128xf32>,
    %c1_i32_77 = arith.constant 1 : i32
    %c0_78 = arith.constant 0 : index
    %c0_79 = arith.constant 0 : index
    %164 = vector.load %arg10[%c0_78, %c0_79] : memref<32x512xf32, #tpu.memory_space<vmem>>, vector<32x128xf32>
    %cst_80 = arith.constant dense<0.000000e+00> : vector<32xf32>
    %165 = vector.multi_reduction <add>, %164, %cst_80 [1] : vector<32x128xf32> to vector<32xf32>
    %166 = vector.shape_cast %165 : vector<32xf32> to vector<32x1xf32>
    %cst_81 = arith.constant 3.125000e-02 : f32
    %167 = vector.broadcast %cst_81 : f32 to vector<32x1xf32>
    %168 = arith.mulf %166, %167 : vector<32x1xf32>
    %169 = arith.mulf %164, %164 : vector<32x128xf32>
    %cst_82 = arith.constant dense<0.000000e+00> : vector<32xf32>
    %170 = vector.multi_reduction <add>, %169, %cst_82 [1] : vector<32x128xf32> to vector<32xf32>
    %171 = vector.shape_cast %170 : vector<32xf32> to vector<32x1xf32>
    %cst_83 = arith.constant 3.125000e-02 : f32
    %172 = vector.broadcast %cst_83 : f32 to vector<32x1xf32>
    %173 = arith.mulf %171, %172 : vector<32x1xf32>
    %174 = arith.mulf %168, %168 : vector<32x1xf32>
    %175 = arith.subf %173, %174 : vector<32x1xf32>
    %c0_84 = arith.constant 0 : index
    %c0_85 = arith.constant 0 : index
    %176 = vector.load %arg5[%c0_84, %c0_85] : memref<1x128xf32, #tpu.memory_space<vmem>>, vector<1x128xf32>
    %cst_86 = arith.constant 9.99999974E-6 : f32
    %177 = vector.broadcast %cst_86 : f32 to vector<32x1xf32>
    %178 = arith.addf %175, %177 : vector<32x1xf32>
    %179 = math.rsqrt %178 : vector<32x1xf32>
    %180 = vector.broadcast %176 : vector<1x128xf32> to vector<32x128xf32>
    %181 = vector.broadcast %179 : vector<32x1xf32> to vector<32x128xf32>
    %182 = arith.mulf %180, %181 : vector<32x128xf32>
    %183 = vector.broadcast %168 : vector<32x1xf32> to vector<32x128xf32>
    %184 = arith.subf %164, %183 : vector<32x128xf32>
    %185 = arith.mulf %184, %182 : vector<32x128xf32>
    %c0_87 = arith.constant 0 : index
    %c0_88 = arith.constant 0 : index
    %186 = vector.load %arg6[%c0_87, %c0_88] : memref<1x128xf32, #tpu.memory_space<vmem>>, vector<1x128xf32>
    %187 = vector.broadcast %186 : vector<1x128xf32> to vector<32x128xf32>
    %188 = arith.addf %185, %187 : vector<32x128xf32>
    %189 = arith.truncf %188 : vector<32x128xf32> to vector<32x128xbf16>
    %c0_89 = arith.constant 0 : index
    %c0_90 = arith.constant 0 : index
    %190 = vector.load %arg7[%c0_89, %c0_90] : memref<128x128xbf16, #tpu.memory_space<vmem>>, vector<128x128xbf16>
    %cst_91 = arith.constant dense<0.000000e+00> : vector<32x128xf32>
    %191 = tpu.matmul %189, %190, %cst_91 {dimension_numbers = #tpu.dot_dimension_numbers<[1], [0], [0], [1], [0, 0, 1, 1], [], []>} : vector<32x128xbf16>, vector<128x128xbf16>, vector<32x128xf32> -> vector<32x128xf32>
    %c0_92 = arith.constant 0 : index
    %c0_93 = arith.constant 0 : index
    %192 = vector.load %arg8[%c0_92, %c0_93] : memref<1x128xf32, #tpu.memory_space<vmem>>, vector<1x128xf32>
    %193 = vector.broadcast %192 : vector<1x128xf32> to vector<32x128xf32>
    %194 = arith.addf %191, %193 : vector<32x128xf32>
    %195 = arith.negf %194 : vector<32x128xf32>
    %196 = math.exp %195 : vector<32x128xf32>
    %cst_94 = arith.constant 1.000000e+00 : f32
    %197 = vector.broadcast %cst_94 : f32 to vector<32x128xf32>
    %198 = arith.addf %197, %196 : vector<32x128xf32>
    %199 = arith.divf %197, %198 : vector<32x128xf32>
    %c0_95 = arith.constant 0 : index
    %c0_96 = arith.constant 0 : index
    %200 = vector.load %arg9[%c0_95, %c0_96] : memref<32x128xf32, #tpu.memory_space<vmem>>, vector<32x128xf32>
    tpu.vector_store %arg9[%c0_95, %c0_96], %199 {strides = array<i32>} : memref<32x128xf32, #tpu.memory_space<vmem>>, vector<32x128xf32>,
    return
  }
  func.func @transform_0(%arg0: i32) -> (i32, i32) {
    %c0_i32 = arith.constant 0 : i32
    %c0_i32_0 = arith.constant 0 : i32
    return %arg0, %c0_i32 : i32, i32
  }
  func.func @transform_1(%arg0: i32) -> (i32, i32) {
    %c0_i32 = arith.constant 0 : i32
    %c0_i32_0 = arith.constant 0 : i32
    %c0_i32_1 = arith.constant 0 : i32
    return %c0_i32, %c0_i32_0 : i32, i32
  }
  func.func @transform_2(%arg0: i32) -> (i32, i32) {
    %c0_i32 = arith.constant 0 : i32
    %c0_i32_0 = arith.constant 0 : i32
    %c0_i32_1 = arith.constant 0 : i32
    return %c0_i32, %c0_i32_0 : i32, i32
  }
  func.func @transform_3(%arg0: i32) -> (i32, i32) {
    %c0_i32 = arith.constant 0 : i32
    %c0_i32_0 = arith.constant 0 : i32
    %c0_i32_1 = arith.constant 0 : i32
    return %c0_i32, %c0_i32_0 : i32, i32
  }
  func.func @transform_4(%arg0: i32) -> (i32, i32) {
    %c0_i32 = arith.constant 0 : i32
    %c0_i32_0 = arith.constant 0 : i32
    %c0_i32_1 = arith.constant 0 : i32
    return %c0_i32, %c0_i32_0 : i32, i32
  }
  func.func @transform_5(%arg0: i32) -> (i32, i32) {
    %c0_i32 = arith.constant 0 : i32
    %c0_i32_0 = arith.constant 0 : i32
    %c0_i32_1 = arith.constant 0 : i32
    return %c0_i32, %c0_i32_0 : i32, i32
  }
  func.func @transform_6(%arg0: i32) -> (i32, i32) {
    %c0_i32 = arith.constant 0 : i32
    %c0_i32_0 = arith.constant 0 : i32
    %c0_i32_1 = arith.constant 0 : i32
    return %c0_i32, %c0_i32_0 : i32, i32
  }
  func.func @transform_7(%arg0: i32) -> (i32, i32) {
    %c0_i32 = arith.constant 0 : i32
    %c0_i32_0 = arith.constant 0 : i32
    %c0_i32_1 = arith.constant 0 : i32
    return %c0_i32, %c0_i32_0 : i32, i32
  }
  func.func @transform_8(%arg0: i32) -> (i32, i32) {
    %c0_i32 = arith.constant 0 : i32
    %c0_i32_0 = arith.constant 0 : i32
    return %arg0, %c0_i32 : i32, i32
  }
}

</mosaic_0001>

<bundles_post_ra>
// kernel: lstm_model_forward.1
= control target key start
LH: loop header
LB: loop body
LE: loop exit
PB: predicated region body
PF: predicated region fallthrough
CT: control target
= control target key end

     0   :  { %s1949_s27 = smov 0   ;;  %s2412_s0 = inlined_call_operand.vmem [shape: bf16[64,16], index: 0, kind: input, shape index: {}]   ;;  %s2413_s1 = inlined_call_operand.vmem [shape: bf16[16,512], index: 1, kind: input, shape index: {}]   ;;  %s2414_s2 = inlined_call_operand.vmem [shape: bf16[128,512], index: 2, kind: input, shape index: {}]   ;;  %s2415_s3 = inlined_call_operand.vmem [shape: f32[1,512], index: 3, kind: input, shape index: {}]   ;;  %s2416_s4 = inlined_call_operand.vmem [shape: f32[1,128], index: 4, kind: input, shape index: {}]   ;;  %s2417_s5 = inlined_call_operand.vmem [shape: f32[1,128], index: 5, kind: input, shape index: {}]   ;;  %s2418_s6 = inlined_call_operand.vmem [shape: bf16[128,128], index: 6, kind: input, shape index: {}]   ;;  %s2419_s7 = inlined_call_operand.vmem [shape: f32[1,128], index: 7, kind: input, shape index: {}]   ;;  %s2420_s8 = inlined_call_operand.vmem [shape: f32[64,128], index: 8, kind: output, shape index: {}]  }
   0x1 LB: > { %s1593_s28 = sadd.s32 4294967295, %s1900_s27   ;;  %p1597_p0 = scmp.ge.s32.totalorder %s1900_s27, 1  ;;  %s1900_s27 = sphi %s1949_s27, %s18_s27  }
   0x2   : > { %p263_p1 = scmp.lt.s32.totalorder %s1900_s27, 3 }
   0x4   : > { %p264_p2 = pnand %p1597_p0, %p263_p1 }
   0x6   : > { %267 = sbr.rel (%p264_p2) target bundleno = 1553 (0x611), region = 52 }
   0xd   : > { %s1598_s29 = sshll.u32 %s1593_s28, 2  ;;  %p1602_p4 = scmp.ne.s32.totalorder %s1593_s28, 0 }
   0xe   : > { %p298_p3 = scmp.lt.s32.totalorder %s1598_s29, 7  ;;  %v1902_v0 = vmov (!%p1602_p4), 0.0  }
   0xf   : > { %313 = sbr.rel (%p1602_p4) target bundleno = 22 (0x16), region = 56  ;;  %314 = vst [vmem:[#allocation3] sm:$0xff] (!%p1602_p4), %v1902_v0  ;;  %315 = vst [vmem:[#allocation4] sm:$0xff] (!%p1602_p4), %v1902_v0 }
  0x10   : > { %s2437_s29 = smov (!%p298_p3, %s1598_s29), 7 }
  0x11   : > { %s1599_s30 = sshll.u32 %s2437_s29, 2  ;;  %s1601_s9 = sshll.u32 %s2437_s29, 3 }
  0x12   : > { %s1960_s12 = scalar_lea.vmem %s2412_s0, %s1599_s30  ;;  %s1965_s15 = scalar_lea.vmem %s2420_s8, %s1601_s9 }
  0x16 PF: > { %v1734_v1 = vld [vmem:[%s2413_s1 + $0x4] ss:$16 sps:$4 sm:$0xff]   ;;  %v2421_v3 = vmov 0   ;;  %v1738_v4 = vld [vmem:[%s2413_s1] ss:$16 sps:$4 sm:$0xff]   ;;  %vm376_vm0 = vcmask 130048   ;;  %v326_v42 = vlaneseq }
  0x17   : > { %v1973_v2 = vld [vmem:[%s2414_s2 + $0x4] ss:$16 sps:$4 sm:$0xff]   ;;  %415 = vmatprep.mubr.bf16.mxu1 %v2421_v3  ;;  %755 = vmatprep.mubr.bf16.mxu0 %v2421_v3  ;;  %v1983_v5 = vld [vmem:[%s2414_s2] ss:$16 sps:$4 sm:$0xff]   ;;  %v1741_v7 = vld [vmem:[%s2413_s1 + $0x8] ss:$16 sps:$4 sm:$0xff]  }
  0x18   : > { %383 = vmatprep.subr.bf16.mxu1 %v1734_v1  ;;  %723 = vmatprep.subr.bf16.mxu0 %v1973_v2  ;;  %v1740_v6 = vld [vmem:[%s1960_s12] sm:$0xff]   ;;  %v1743_v8 = vld [vmem:[%s2413_s1 + $0xc] ss:$16 sps:$4 sm:$0xff]   ;;  %v2061_v20 = vld [vmem:[%s2414_s2 + $0x8] ss:$16 sps:$4 sm:$0xff]   ;;  %v327_v43 = vshrl.u32 %v326_v42, 7 }
  0x19   : > { %384 = vmatpush1.bf16.msra.mxu1 %v1738_v4  ;;  %724 = vmatpush1.bf16.msra.mxu0 %v1983_v5  ;;  %v1997_v9 = vld [vmem:[%s2414_s2 + $0x24] ss:$16 sps:$4 sm:$0xff]   ;;  %v2002_v10 = vld [vmem:[%s2414_s2 + $0x20] ss:$16 sps:$4 sm:$0xff]   ;;  %v1750_v14 = vld [vmem:[%s1960_s12 + $0x8] sm:$0xff]  }
  0x1a   : > { %436 = vmatprep.subr.bf16.mxu1 %v1743_v8  ;;  %725 = vmatprep.subr.bf16.mxu0 %v1997_v9  ;;  %v2009_v11 = vld [vmem:[%s2414_s2 + $0x44] ss:$16 sps:$4 sm:$0xff]   ;;  %v2015_v12 = vld [vmem:[%s2414_s2 + $0x40] ss:$16 sps:$4 sm:$0xff]   ;;  %v2034_v16 = vld [vmem:[%s2414_s2 + $0xc] ss:$16 sps:$4 sm:$0xff]  }
  0x1b   : > { %v2022_v13 = vld [vmem:[%s2414_s2 + $0x64] ss:$16 sps:$4 sm:$0xff]   ;;  %v2028_v15 = vld [vmem:[%s2414_s2 + $0x60] ss:$16 sps:$4 sm:$0xff]   ;;  %v2071_v22 = vld [vmem:[%s2414_s2 + $0x2c] ss:$16 sps:$4 sm:$0xff]  }
  0x1c   : > { %1609 = vmatmul.mubr.msk.bf16.vlgmr.msra.gmra.mrb[0].mxu1 %vm376_vm0, %v1740_v6  ;;  %v2040_v17 = vld [vmem:[%s2414_s2 + $0x84] ss:$16 sps:$4 sm:$0xff]   ;;  %v2048_v18 = vld [vmem:[%s2414_s2 + $0x80] ss:$16 sps:$4 sm:$0xff]   ;;  %v2083_v24 = vld [vmem:[%s2414_s2 + $0x28] ss:$16 sps:$4 sm:$0xff]  }
  0x1d   : > { %437 = vmatpush1.bf16.msra.mxu1 %v1741_v7  ;;  %726 = vmatpush1.bf16.msra.mxu0 %v2002_v10  ;;  %v2055_v19 = vld [vmem:[%s2414_s2 + $0xa4] ss:$16 sps:$4 sm:$0xff]   ;;  %v2066_v21 = vld [vmem:[%s2414_s2 + $0xa0] ss:$16 sps:$4 sm:$0xff]   ;;  %v2095_v26 = vld [vmem:[%s2414_s2 + $0x4c] ss:$16 sps:$4 sm:$0xff]  }
  0x1e   : > { %727 = vmatprep.subr.bf16.mxu0 %v2009_v11  ;;  %425 = vmatprep.mubr.bf16.mxu1 %v2421_v3  ;;  %v2077_v23 = vld [vmem:[%s2414_s2 + $0xc4] ss:$16 sps:$4 sm:$0xff]   ;;  %v2090_v25 = vld [vmem:[%s2414_s2 + $0xc0] ss:$16 sps:$4 sm:$0xff]   ;;  %v2107_v28 = vld [vmem:[%s2414_s2 + $0x48] ss:$16 sps:$4 sm:$0xff]  }
  0x1f   : > { %764 = vmatprep.subr.bf16.mxu1 %v2034_v16  ;;  %v2102_v27 = vld [vmem:[%s2414_s2 + $0xe4] ss:$16 sps:$4 sm:$0xff]   ;;  %v2112_v29 = vld [vmem:[%s2414_s2 + $0xe0] ss:$16 sps:$4 sm:$0xff]   ;;  %v2118_v31 = vld [vmem:[%s2414_s2 + $0x6c] ss:$16 sps:$4 sm:$0xff]  }
  0x20   : > { %v561_v30 = vld [vmem:[#allocation3] sm:$0xff]  ;;  %v2130_v33 = vld [vmem:[%s2414_s2 + $0x68] ss:$16 sps:$4 sm:$0xff]   ;;  %v2136_v34 = vld [vmem:[%s2414_s2 + $0x8c] ss:$16 sps:$4 sm:$0xff]   ;;  %v328_v44 = vsub.s32 0, %v327_v43 }
  0x21   : > { %728 = vmatpush1.bf16.msra.mxu0 %v2015_v12  ;;  %v562_v32 = vpack.c.bf16 %v561_v30, %v561_v30  ;;  %v2144_v35 = vld [vmem:[%s2414_s2 + $0x88] ss:$16 sps:$4 sm:$0xff]   ;;  %v2151_v36 = vld [vmem:[%s2414_s2 + $0xac] ss:$16 sps:$4 sm:$0xff]   ;;  %v324_v45 = vld [vmem:[%s2415_s3] sm:$0xf] }
  0x22   : > { %729 = vmatprep.subr.bf16.mxu0 %v2022_v13  ;;  %v2159_v37 = vld [vmem:[%s2414_s2 + $0xa8] ss:$16 sps:$4 sm:$0xff]   ;;  %v2166_v38 = vld [vmem:[%s2414_s2 + $0xcc] ss:$16 sps:$4 sm:$0xff]   ;;  %v332_v46 = vsub.s32 1, %v327_v43  ;;  %v329_v48 = vrot.slane %v324_v45, %v328_v44  ;;  %v336_v63 = vsub.s32 2, %v327_v43 }
  0x23   : > { %v2173_v39 = vld [vmem:[%s2414_s2 + $0xc8] ss:$16 sps:$4 sm:$0xff]   ;;  %v2180_v40 = vld [vmem:[%s2414_s2 + $0xec] ss:$16 sps:$4 sm:$0xff]   ;;  %v340_v0 = vsub.s32 3, %v327_v43 }
  0x24   : > { %1610 = vmatmul.mubr.msk.bf16.gmra.mrb[4].mxu1 %vm376_vm0, %v1750_v14  ;;  %v2187_v41 = vld [vmem:[%s2414_s2 + $0xe8] ss:$16 sps:$4 sm:$0xff]   ;;  %v333_v50 = vrot.slane %v324_v45, %v332_v46  ;;  %v337_v4 = vrot.slane %v324_v45, %v336_v63 }
  0x25   : > { %730 = vmatpush1.bf16.msra.mxu0 %v2028_v15  ;;  %468 = vmatprep.mubr.bf16.mxu1 %v2421_v3  ;;  %v341_v7 = vrot.slane %v324_v45, %v340_v0 }
  0x26   : > { %731 = vmatprep.subr.bf16.mxu0 %v2040_v17 }
  0x29   : > { %732 = vmatpush1.bf16.msra.mxu0 %v2048_v18 }
  0x2a   : > { %733 = vmatprep.subr.bf16.mxu0 %v2055_v19 }
  0x2c   : > { %1611 = vmatmul.mubr.msk.bf16.vlgmr.msra.gmra.mrb[8].mxu1 %vm376_vm0, %v1740_v6 }
  0x2d   : > { %765 = vmatpush1.bf16.msra.mxu1 %v2061_v20  ;;  %734 = vmatpush1.bf16.msra.mxu0 %v2066_v21 }
  0x2e   : > { %766 = vmatprep.subr.bf16.mxu1 %v2071_v22  ;;  %735 = vmatprep.subr.bf16.mxu0 %v2077_v23 }
  0x2f   : > { %478 = vmatprep.mubr.bf16.mxu1 %v2421_v3 }
  0x31   : > { %767 = vmatpush1.bf16.msra.mxu1 %v2083_v24  ;;  %736 = vmatpush1.bf16.msra.mxu0 %v2090_v25 }
  0x32   : > { %768 = vmatprep.subr.bf16.mxu1 %v2095_v26  ;;  %737 = vmatprep.subr.bf16.mxu0 %v2102_v27 }
  0x34   : > { %1612 = vmatmul.mubr.msk.bf16.gmra.mrb[12].mxu1 %vm376_vm0, %v1750_v14 }
  0x35   : > { %769 = vmatpush1.bf16.msra.mxu1 %v2107_v28  ;;  %738 = vmatpush1.bf16.msra.mxu0 %v2112_v29 }
  0x36   : > { %770 = vmatprep.subr.bf16.mxu1 %v2118_v31  ;;  %796 = vmatprep.mubr.bf16.mxu1 %v2421_v3 }
  0x37   : > { %871 = vmatprep.subr.bf16.mxu0 %v1973_v2 }
  0x38   : > { %756 = vmatmul.mubr.bf16.vlgmr.msra.gmra.mrb[0].mxu0 %v562_v32 }
  0x39   : > { %771 = vmatpush1.bf16.msra.mxu1 %v2130_v33  ;;  %872 = vmatpush1.bf16.msra.mxu0 %v1983_v5 }
  0x3a   : > { %772 = vmatprep.subr.bf16.mxu1 %v2136_v34  ;;  %873 = vmatprep.subr.bf16.mxu0 %v1997_v9 }
  0x3b   : > { %903 = vmatprep.mubr.bf16.mxu0 %v2421_v3 }
  0x3d   : > { %773 = vmatpush1.bf16.msra.mxu1 %v2144_v35  ;;  %874 = vmatpush1.bf16.msra.mxu0 %v2002_v10 }
  0x3e   : > { %774 = vmatprep.subr.bf16.mxu1 %v2151_v36  ;;  %875 = vmatprep.subr.bf16.mxu0 %v2009_v11 }
  0x41   : > { %775 = vmatpush1.bf16.msra.mxu1 %v2159_v37  ;;  %876 = vmatpush1.bf16.msra.mxu0 %v2015_v12 }
  0x42   : > { %776 = vmatprep.subr.bf16.mxu1 %v2166_v38  ;;  %877 = vmatprep.subr.bf16.mxu0 %v2022_v13 }
  0x45   : > { %777 = vmatpush1.bf16.msra.mxu1 %v2173_v39  ;;  %878 = vmatpush1.bf16.msra.mxu0 %v2028_v15 }
  0x46   : > { %778 = vmatprep.subr.bf16.mxu1 %v2180_v40  ;;  %879 = vmatprep.subr.bf16.mxu0 %v2040_v17 }
  0x49   : > { %779 = vmatpush1.bf16.msra.mxu1 %v2187_v41  ;;  %880 = vmatpush1.bf16.msra.mxu0 %v2048_v18 }
  0x4a   : > { %912 = vmatprep.subr.bf16.mxu1 %v2034_v16  ;;  %881 = vmatprep.subr.bf16.mxu0 %v2055_v19 }
  0x4c   : > { %797 = vmatmul.mubr.bf16.vlgmr.msra.gmra.mrb[16].mxu1 %v562_v32 }
  0x4d   : > { %913 = vmatpush1.bf16.msra.mxu1 %v2061_v20  ;;  %882 = vmatpush1.bf16.msra.mxu0 %v2066_v21 }
  0x4e   : > { %914 = vmatprep.subr.bf16.mxu1 %v2071_v22  ;;  %883 = vmatprep.subr.bf16.mxu0 %v2077_v23 }
  0x4f   : > { %944 = vmatprep.mubr.bf16.mxu1 %v2421_v3 }
  0x51   : > { %915 = vmatpush1.bf16.msra.mxu1 %v2083_v24  ;;  %884 = vmatpush1.bf16.msra.mxu0 %v2090_v25 }
  0x52   : > { %916 = vmatprep.subr.bf16.mxu1 %v2095_v26  ;;  %885 = vmatprep.subr.bf16.mxu0 %v2102_v27 }
  0x55   : > { %917 = vmatpush1.bf16.msra.mxu1 %v2107_v28  ;;  %886 = vmatpush1.bf16.msra.mxu0 %v2112_v29 }
  0x56   : > { %918 = vmatprep.subr.bf16.mxu1 %v2118_v31  ;;  %1019 = vmatprep.subr.bf16.mxu0 %v1973_v2 }
  0x59   : > { %919 = vmatpush1.bf16.msra.mxu1 %v2130_v33 }
  0x5a   : > { %920 = vmatprep.subr.bf16.mxu1 %v2136_v34 }
  0x5d   : > { %921 = vmatpush1.bf16.msra.mxu1 %v2144_v35 }
  0x5e   : > { %922 = vmatprep.subr.bf16.mxu1 %v2151_v36 }
  0x61   : > { %923 = vmatpush1.bf16.msra.mxu1 %v2159_v37 }
  0x62   : > { %924 = vmatprep.subr.bf16.mxu1 %v2166_v38 }
  0x65   : > { %925 = vmatpush1.bf16.msra.mxu1 %v2173_v39 }
  0x66   : > { %926 = vmatprep.subr.bf16.mxu1 %v2180_v40 }
  0x69   : > { %927 = vmatpush1.bf16.msra.mxu1 %v2187_v41 }
  0x6a   : > { %1060 = vmatprep.subr.bf16.mxu1 %v2034_v16 }
  0xef   : > { %v417_v47 = vpop.f32.mrb[0].mxu1 }
  0xf0   : > { %v419_v49 = vpop.f32.mrb[1].mxu1 }
  0xf1   : > { %v421_v51 = vpop.f32.mrb[2].mxu1 }
  0xf2   : > { %v2222_v52 = vadd.f32 %v421_v51, %v329_v48  ;;  %v423_v53 = vpop.f32.mrb[3].mxu1 }
  0xf3   : > { %v2224_v54 = vadd.f32 %v423_v53, %v333_v50 }
  0xf7   : > { %v427_v55 = vpop.f32.mrb[4].mxu1 }
  0xf8   : > { %v2226_v56 = vadd.f32 %v427_v55, %v329_v48  ;;  %v429_v57 = vpop.f32.mrb[5].mxu1  ;;  %v418_v55 = vadd.f32 %v417_v47, %v329_v48 }
  0xf9   : > { %v2228_v58 = vadd.f32 %v429_v57, %v333_v50  ;;  %v431_v59 = vpop.f32.mrb[6].mxu1 }
  0xfa   : > { %v2230_v60 = vadd.f32 %v431_v59, %v329_v48  ;;  %v433_v61 = vpop.f32.mrb[7].mxu1  ;;  %v420_v59 = vadd.f32 %v419_v49, %v333_v50 }
  0xfb   : > { %2423 = vst [vmem:[#allocation5_spill] sm:$0xff] %v2228_v58  ;;  %v2232_v62 = vadd.f32 %v433_v61, %v333_v50 }
  0xfc   : > { %2424 = vst [vmem:[#allocation6_spill] sm:$0xff] %v2230_v60 }
  0xfd   : > { %2425 = vst [vmem:[#allocation7_spill] sm:$0xff] %v2232_v62 }
  0xff   : > { %v470_v1 = vpop.f32.mrb[8].mxu1 }
 0x100   : > { %v472_v6 = vpop.f32.mrb[9].mxu1  ;;  %v471_v62 = vadd.f32 %v470_v1, %v337_v4 }
 0x101   : > { %v474_v8 = vpop.f32.mrb[10].mxu1 }
 0x102   : > { %v2234_v14 = vadd.f32 %v474_v8, %v337_v4  ;;  %v476_v30 = vpop.f32.mrb[11].mxu1 }
 0x103   : > { %v2236_v32 = vadd.f32 %v476_v30, %v341_v7 }
 0x107   : > { %v480_v42 = vpop.f32.mrb[12].mxu1 }
 0x108   : > { %v2238_v44 = vadd.f32 %v480_v42, %v337_v4  ;;  %v482_v46 = vpop.f32.mrb[13].mxu1  ;;  %v473_v42 = vadd.f32 %v472_v6, %v341_v7 }
 0x109   : > { %v2240_v51 = vadd.f32 %v482_v46, %v341_v7  ;;  %v484_v53 = vpop.f32.mrb[14].mxu1 }
 0x10a   : > { %2426 = vst [vmem:[#allocation8_spill] sm:$0xff] %v2238_v44  ;;  %v2242_v57 = vadd.f32 %v484_v53, %v337_v4  ;;  %v486_v43 = vpop.f32.mrb[15].mxu1 }
 0x10b   : > { %2427 = vst [vmem:[#allocation9_spill] sm:$0xff] %v2240_v51  ;;  %v757_v61 = vpop.f32.mrb[0].mxu0  ;;  %v2244_v45 = vadd.f32 %v486_v43, %v341_v7 }
 0x10c   : > { %2428 = vst [vmem:[#allocation10_spill] sm:$0xff] %v2242_v57  ;;  %v805_v63 = vadd.f32 %v757_v61, %v418_v55  ;;  %v759_v0 = vpop.f32.mrb[1].mxu0 }
 0x10d   : > { %v806_v8 = vadd.f32 %v759_v0, %v420_v59  ;;  %v761_v30 = vpop.f32.mrb[2].mxu0 }
 0x10e   : > { %v762_v3 = vpop.f32.mrb[3].mxu0  ;;  %v1646_v44 = vmul.f32 -1.442695, %v805_v63 }
 0x10f   : > { %v1647_v58 = vmul.f32 -1.442695, %v806_v8 }
 0x111   : > { %1798 = vpow2.f32 %v1647_v58 }
 0x112   : > { %1800 = vpow2.f32 %v1646_v44 }
 0x11b   : > { %v1799_v50 = vpop.eup %1798 }
 0x11c   : > { %v1801_v55 = vpop.eup %1800  ;;  %v830_v3 = vadd.f32 1.0, %v1799_v50 }
 0x11d   : > { %v829_v4 = vadd.f32 1.0, %v1801_v55 }
 0x11f   : > { %v798_v60 = vpop.f32.mrb[16].mxu1 }
 0x120   : > { %v807_v46 = vadd.f32 %v798_v60, %v471_v62  ;;  %v800_v51 = vpop.f32.mrb[17].mxu1 }
 0x121   : > { %v808_v47 = vadd.f32 %v800_v51, %v473_v42  ;;  %v802_v48 = vpop.f32.mrb[18].mxu1  ;;  %v853_v51 = vld [vmem:[#allocation4] sm:$0xff] }
 0x122   : > { %v1645_v53 = vmul.f32 -2.0, %v807_v46  ;;  %v803_v57 = vpop.f32.mrb[19].mxu1  ;;  %v2429_v48 = vmov 0  }
 0x123   : > { %v1648_v59 = vmul.f32 -1.442695, %v808_v47 }
 0x124   : > { %v825_v49 = vmul.f32 1.442695, %v1645_v53 }
 0x126   : > { %1802 = vpow2.f32 %v825_v49 }
 0x130   : > { %v1803_v43 = vpop.eup %1802 }
 0x131   : > { %v831_v1 = vadd.f32 1.0, %v1803_v43 }
 0x133   : > { %1804 = vrcp.f32 %v831_v1 }
 0x134   : > { %1806 = vpow2.f32 %v1648_v59 }
 0x135   : > { %1808 = vrcp.f32 %v830_v3 }
 0x136   : > { %1810 = vrcp.f32 %v829_v4 }
 0x13d   : > { %v1805_v60 = vpop.eup %1804 }
 0x13e   : > { %v1807_v62 = vpop.eup %1806  ;;  %v843_v6 = vmul.f32 2.0, %v1805_v60 }
 0x13f   : > { %v1809_v7 = vpop.eup %1808  ;;  %v832_v44 = vadd.f32 1.0, %v1807_v62 }
 0x140   : > { %v1651_v58 = vadd.f32 -1.0, %v843_v6  ;;  %v1811_v57 = vpop.eup %1810  ;;  %v854_v61 = vmul.f32 %v1809_v7, %v853_v51 }
 0x141   : > { %1812 = vrcp.f32 %v832_v44 }
 0x142   : > { %v855_v63 = vmul.f32 %v1811_v57, %v1651_v58 }
 0x144   : > { %v2246_v0 = vadd.f32 %v855_v63, %v854_v61 }
 0x146   : > { %1814 = vtanh.f32 %v2246_v0 }
 0x14b   : > { %v1813_v8 = vpop.eup %1812 }
 0x150   : > { %v1815_v30 = vpop.eup %1814 }
 0x151   : > { %v2249_v42 = vmul.f32 %v1815_v30, %v1813_v8 }
 0x153   : > { %1310 = vadd.xlane.f32.xlu0 %v2249_v42  ;;  %v870_v46 = vpack.c.bf16 %v2249_v42, %v2249_v42  ;;  %v1322_v47 = vmul.f32 %v2249_v42, %v2249_v42 }
 0x155   : > { %904 = vmatmul.mubr.bf16.vlgmr.msra.gmra.mrb[4].mxu0 %v870_v46  ;;  %945 = vmatmul.mubr.bf16.vlgmr.msra.gmra.mrb[20].mxu1 %v870_v46 }
 0x156   : > { %1020 = vmatpush1.bf16.msra.mxu0 %v1983_v5  ;;  %1061 = vmatpush1.bf16.msra.mxu1 %v2061_v20 }
 0x157   : > { %1326 = vadd.xlane.f32.xlu0 %v1322_v47  ;;  %1021 = vmatprep.subr.bf16.mxu0 %v1997_v9 }
 0x158   : > { %1062 = vmatprep.subr.bf16.mxu1 %v2071_v22  ;;  %1051 = vmatprep.mubr.bf16.mxu0 %v2429_v48 }
 0x159   : > { %1092 = vmatprep.mubr.bf16.mxu1 %v2429_v48 }
 0x15a   : > { %1022 = vmatpush1.bf16.msra.mxu0 %v2002_v10  ;;  %1063 = vmatpush1.bf16.msra.mxu1 %v2083_v24 }
 0x15b   : > { %1023 = vmatprep.subr.bf16.mxu0 %v2009_v11  ;;  %1064 = vmatprep.subr.bf16.mxu1 %v2095_v26 }
 0x15e   : > { %1024 = vmatpush1.bf16.msra.mxu0 %v2015_v12  ;;  %1065 = vmatpush1.bf16.msra.mxu1 %v2107_v28 }
 0x15f   : > { %1025 = vmatprep.subr.bf16.mxu0 %v2022_v13  ;;  %1066 = vmatprep.subr.bf16.mxu1 %v2118_v31 }
 0x162   : > { %1026 = vmatpush1.bf16.msra.mxu0 %v2028_v15  ;;  %1067 = vmatpush1.bf16.msra.mxu1 %v2130_v33 }
 0x163   : > { %1027 = vmatprep.subr.bf16.mxu0 %v2040_v17  ;;  %1068 = vmatprep.subr.bf16.mxu1 %v2136_v34 }
 0x166   : > { %1028 = vmatpush1.bf16.msra.mxu0 %v2048_v18  ;;  %1069 = vmatpush1.bf16.msra.mxu1 %v2144_v35 }
 0x167   : > { %1029 = vmatprep.subr.bf16.mxu0 %v2055_v19  ;;  %1070 = vmatprep.subr.bf16.mxu1 %v2151_v36 }
 0x16a   : > { %1030 = vmatpush1.bf16.msra.mxu0 %v2066_v21  ;;  %1071 = vmatpush1.bf16.msra.mxu1 %v2159_v37 }
 0x16b   : > { %1031 = vmatprep.subr.bf16.mxu0 %v2077_v23  ;;  %1072 = vmatprep.subr.bf16.mxu1 %v2166_v38 }
 0x16e   : > { %1032 = vmatpush1.bf16.msra.mxu0 %v2090_v25  ;;  %1073 = vmatpush1.bf16.msra.mxu1 %v2173_v39 }
 0x16f   : > { %1033 = vmatprep.subr.bf16.mxu0 %v2102_v27  ;;  %1074 = vmatprep.subr.bf16.mxu1 %v2180_v40 }
 0x172   : > { %1034 = vmatpush1.bf16.msra.mxu0 %v2112_v29  ;;  %1075 = vmatpush1.bf16.msra.mxu1 %v2187_v41 }
 0x173   : > { %1167 = vmatprep.subr.bf16.mxu0 %v1973_v2  ;;  %1208 = vmatprep.subr.bf16.mxu1 %v2034_v16 }
 0x228   : > { %v905_v53 = vpop.f32.mrb[4].mxu0  ;;  %v946_v49 = vpop.f32.mrb[20].mxu1 }
 0x229   : > { %v953_v50 = vadd.f32 %v905_v53, %v2222_v52  ;;  %v955_v55 = vadd.f32 %v946_v49, %v2234_v14  ;;  %v907_v43 = vpop.f32.mrb[5].mxu0  ;;  %v948_v59 = vpop.f32.mrb[21].mxu1 }
 0x22a   : > { %v954_v3 = vadd.f32 %v907_v43, %v2224_v54  ;;  %v956_v1 = vadd.f32 %v948_v59, %v2236_v32  ;;  %v909_v4 = vpop.f32.mrb[6].mxu0  ;;  %v950_v60 = vpop.f32.mrb[22].mxu1 }
 0x22b   : > { %v1654_v62 = vmul.f32 -1.442695, %v953_v50  ;;  %v1653_v6 = vmul.f32 -2.0, %v955_v55  ;;  %v910_v7 = vpop.f32.mrb[7].mxu0  ;;  %v951_v2 = vpop.f32.mrb[23].mxu1 }
 0x22c   : > { %v1655_v51 = vmul.f32 -1.442695, %v954_v3  ;;  %v1656_v57 = vmul.f32 -1.442695, %v956_v1 }
 0x22d   : > { %1816 = vpow2.f32 %v1654_v62  ;;  %v973_v16 = vmul.f32 1.442695, %v1653_v6 }
 0x22e   : > { %1818 = vpow2.f32 %v1655_v51 }
 0x22f   : > { %1820 = vpow2.f32 %v973_v16 }
 0x237   : > { %v1817_v52 = vpop.eup %1816 }
 0x238   : > { %v1819_v58 = vpop.eup %1818  ;;  %v977_v54 = vadd.f32 1.0, %v1817_v52 }
 0x239   : > { %v1821_v14 = vpop.eup %1820  ;;  %v978_v61 = vadd.f32 1.0, %v1819_v58 }
 0x23a   : > { %v979_v44 = vadd.f32 1.0, %v1821_v14 }
 0x23c   : > { %1822 = vrcp.f32 %v979_v44 }
 0x23d   : > { %1824 = vpow2.f32 %v1656_v57 }
 0x23e   : > { %1826 = vrcp.f32 %v978_v61 }
 0x23f   : > { %1828 = vrcp.f32 %v977_v54 }
 0x246   : > { %v1823_v32 = vpop.eup %1822 }
 0x247   : > { %v1825_v63 = vpop.eup %1824  ;;  %v991_v8 = vmul.f32 2.0, %v1823_v32 }
 0x248   : > { %v1827_v30 = vpop.eup %1826  ;;  %v980_v53 = vadd.f32 1.0, %v1825_v63 }
 0x249   : > { %v1659_v46 = vadd.f32 -1.0, %v991_v8  ;;  %v1829_v47 = vpop.eup %1828  ;;  %v1002_v50 = vmul.f32 %v1827_v30, %v2246_v0 }
 0x24a   : > { %1830 = vrcp.f32 %v980_v53 }
 0x24b   : > { %v1003_v49 = vmul.f32 %v1829_v47, %v1659_v46  ;;  %v2348_v47 = vld [vmem:[%s2416_s4] ss:$0 sm:$0xff] }
 0x24d   : > { %v2295_v55 = vadd.f32 %v1003_v49, %v1002_v50 }
 0x24f   : > { %1832 = vtanh.f32 %v2295_v55 }
 0x254   : > { %v1831_v43 = vpop.eup %1830 }
 0x259   : > { %v1833_v59 = vpop.eup %1832 }
 0x25a   : > { %v2298_v3 = vmul.f32 %v1833_v59, %v1831_v43 }
 0x25c   : > { %1312 = vadd.xlane.f32.xlu0 %v2298_v3  ;;  %v1323_v1 = vmul.f32 %v2298_v3, %v2298_v3  ;;  %v1018_v4 = vpack.c.bf16 %v2298_v3, %v2298_v3 }
 0x25e   : > { %1328 = vadd.xlane.f32.xlu1 %v1323_v1  ;;  %1052 = vmatmul.mubr.bf16.vlgmr.msra.gmra.mrb[8].mxu0 %v1018_v4 }
 0x25f   : > { %1093 = vmatmul.mubr.bf16.vlgmr.msra.gmra.mrb[24].mxu1 %v1018_v4  ;;  %1168 = vmatpush1.bf16.msra.mxu0 %v1983_v5  ;;  %v1311_v5 = vpop.xlane.xlu0 %1310  ;;  %v2357_v4 = vld [vmem:[%s2417_s5] ss:$0 sm:$0xff] }
 0x260   : > { %1209 = vmatpush1.bf16.msra.mxu1 %v2061_v20  ;;  %1169 = vmatprep.subr.bf16.mxu0 %v1997_v9 }
 0x261   : > { %1210 = vmatprep.subr.bf16.mxu1 %v2071_v22  ;;  %1199 = vmatprep.mubr.bf16.mxu0 %v2429_v48  ;;  %v2432_v22 = vld [vmem:[#allocation9_spill] sm:$0xff] }
 0x262   : > { %1240 = vmatprep.mubr.bf16.mxu1 %v2429_v48 }
 0x263   : > { %1170 = vmatpush1.bf16.msra.mxu0 %v2002_v10 }
 0x264   : > { %1211 = vmatpush1.bf16.msra.mxu1 %v2083_v24  ;;  %1171 = vmatprep.subr.bf16.mxu0 %v2009_v11 }
 0x265   : > { %1212 = vmatprep.subr.bf16.mxu1 %v2095_v26 }
 0x267   : > { %1172 = vmatpush1.bf16.msra.mxu0 %v2015_v12 }
 0x268   : > { %1213 = vmatpush1.bf16.msra.mxu1 %v2107_v28  ;;  %1173 = vmatprep.subr.bf16.mxu0 %v2022_v13  ;;  %v2430_v13 = vld [vmem:[#allocation8_spill] sm:$0xff] }
 0x269   : > { %1214 = vmatprep.subr.bf16.mxu1 %v2118_v31 }
 0x26b   : > { %1174 = vmatpush1.bf16.msra.mxu0 %v2028_v15 }
 0x26c   : > { %1215 = vmatpush1.bf16.msra.mxu1 %v2130_v33  ;;  %1175 = vmatprep.subr.bf16.mxu0 %v2040_v17  ;;  %v2431_v17 = vld [vmem:[#allocation5_spill] sm:$0xff] }
 0x26d   : > { %1216 = vmatprep.subr.bf16.mxu1 %v2136_v34 }
 0x26f   : > { %1176 = vmatpush1.bf16.msra.mxu0 %v2048_v18 }
 0x270   : > { %1217 = vmatpush1.bf16.msra.mxu1 %v2144_v35  ;;  %1177 = vmatprep.subr.bf16.mxu0 %v2055_v19 }
 0x271   : > { %1218 = vmatprep.subr.bf16.mxu1 %v2151_v36 }
 0x273   : > { %1178 = vmatpush1.bf16.msra.mxu0 %v2066_v21 }
 0x274   : > { %1219 = vmatpush1.bf16.msra.mxu1 %v2159_v37  ;;  %1179 = vmatprep.subr.bf16.mxu0 %v2077_v23 }
 0x275   : > { %1220 = vmatprep.subr.bf16.mxu1 %v2166_v38  ;;  %v1318_v38 = vmul.f32 0.03125, %v1311_v5 }
 0x277   : > { %1180 = vmatpush1.bf16.msra.mxu0 %v2090_v25  ;;  %v1338_v62 = vmul.f32 %v1318_v38, %v1318_v38 }
 0x278   : > { %1221 = vmatpush1.bf16.msra.mxu1 %v2173_v39  ;;  %1181 = vmatprep.subr.bf16.mxu0 %v2102_v27 }
 0x279   : > { %1222 = vmatprep.subr.bf16.mxu1 %v2180_v40 }
 0x27b   : > { %1182 = vmatpush1.bf16.msra.mxu0 %v2112_v29  ;;  %v1327_v29 = vpop.xlane.xlu0 %1326 }
 0x27c   : > { %1223 = vmatpush1.bf16.msra.mxu1 %v2187_v41  ;;  %v1334_v0 = vmul.f32 0.03125, %v1327_v29 }
 0x27e   : > { %v1342_v2 = vsub.f32 %v1334_v0, %v1338_v62 }
 0x280   : > { %v1347_v16 = vadd.f32 1e-05, %v1342_v2 }
 0x2e9   : > { %v1313_v33 = vpop.xlane.xlu0 %1312 }
 0x2ea   : > { %v1319_v34 = vmul.f32 0.03125, %v1313_v33 }
 0x2eb   : > { %v1329_v35 = vpop.xlane.xlu1 %1328 }
 0x2ec   : > { %v1339_v39 = vmul.f32 %v1319_v34, %v1319_v34  ;;  %v1335_v40 = vmul.f32 0.03125, %v1329_v35  ;;  %v1366_v49 = vsub.f32 %v2298_v3, %v1319_v34 }
 0x2ee   : > { %v1343_v6 = vsub.f32 %v1335_v40, %v1339_v39 }
 0x2f0   : > { %v1348_v51 = vadd.f32 1e-05, %v1343_v6 }
 0x331   : > { %v1053_v9 = vpop.f32.mrb[8].mxu0 }
 0x332   : > { %v1101_v10 = vadd.f32 %v1053_v9, %v2226_v56  ;;  %v1094_v11 = vpop.f32.mrb[24].mxu1  ;;  %v1055_v12 = vpop.f32.mrb[9].mxu0 }
 0x333   : > { %v1103_v15 = vadd.f32 %v1094_v11, %v2430_v13  ;;  %v1102_v18 = vadd.f32 %v1055_v12, %v2431_v17  ;;  %v1096_v19 = vpop.f32.mrb[25].mxu1  ;;  %v1057_v20 = vpop.f32.mrb[10].mxu0  ;;  %v1790_v13 = vld [vmem:[%s2418_s6] sm:$0xff]   ;;  %v2433_v17 = vld [vmem:[#allocation6_spill] sm:$0xff] }
 0x334   : > { %v1662_v21 = vmul.f32 -1.442695, %v1101_v10  ;;  %v1104_v23 = vadd.f32 %v1096_v19, %v2432_v22  ;;  %v1098_v24 = vpop.f32.mrb[26].mxu1  ;;  %v1058_v25 = vpop.f32.mrb[11].mxu0  ;;  %1704 = vmatprep.subr.bf16.mxu0 %v1790_v13 }
 0x335   : > { %v1661_v26 = vmul.f32 -2.0, %v1103_v15  ;;  %v1663_v27 = vmul.f32 -1.442695, %v1102_v18  ;;  %v1099_v28 = vpop.f32.mrb[27].mxu1 }
 0x336   : > { %v1664_v56 = vmul.f32 -1.442695, %v1104_v23  ;;  %v2435_v23 = vld [vmem:[#allocation7_spill] sm:$0xff] }
 0x337   : > { %v1121_v31 = vmul.f32 1.442695, %v1661_v26  ;;  %1834 = vpow2.f32 %v1663_v27 }
 0x338   : > { %1836 = vpow2.f32 %v1662_v21  ;;  %v2434_v21 = vld [vmem:[#allocation10_spill] sm:$0xff] }
 0x339   : > { %1838 = vpow2.f32 %v1121_v31 }
 0x341   : > { %v1835_v36 = vpop.eup %1834 }
 0x342   : > { %v1837_v37 = vpop.eup %1836  ;;  %v1126_v60 = vadd.f32 1.0, %v1835_v36 }
 0x343   : > { %v1839_v41 = vpop.eup %1838  ;;  %v1125_v7 = vadd.f32 1.0, %v1837_v37 }
 0x344   : > { %v1127_v48 = vadd.f32 1.0, %v1839_v41 }
 0x346   : > { %1840 = vrcp.f32 %v1127_v48 }
 0x347   : > { %1842 = vpow2.f32 %v1664_v56 }
 0x348   : > { %1844 = vrcp.f32 %v1126_v60 }
 0x349   : > { %1846 = vrcp.f32 %v1125_v7 }
 0x34a   : > { %1848 = vrsqrt.f32 %v1348_v51 }
 0x34b   : > { %1850 = vrsqrt.f32 %v1347_v16 }
 0x350   : > { %v1841_v52 = vpop.eup %1840 }
 0x351   : > { %v1843_v58 = vpop.eup %1842  ;;  %v1139_v14 = vmul.f32 2.0, %v1841_v52 }
 0x352   : > { %v1845_v57 = vpop.eup %1844  ;;  %v1128_v54 = vadd.f32 1.0, %v1843_v58 }
 0x353   : > { %v1667_v44 = vadd.f32 -1.0, %v1139_v14  ;;  %v1847_v61 = vpop.eup %1846  ;;  %v1150_v63 = vmul.f32 %v1845_v57, %v2295_v55  ;;  %v1365_v55 = vsub.f32 %v2249_v42, %v1318_v38 }
 0x354   : > { %v1849_v30 = vpop.eup %1848  ;;  %1852 = vrcp.f32 %v1128_v54  ;;  %v1792_v54 = vld [vmem:[%s2418_s6 + $0x10] sm:$0xff]  }
 0x355   : > { %v1151_v32 = vmul.f32 %v1847_v61, %v1667_v44  ;;  %v1851_v46 = vpop.eup %1850  ;;  %v1362_v53 = vmul.f32 %v1849_v30, %v2348_v47  ;;  %v1791_v61 = vld [vmem:[%s2418_s6 + $0x8] sm:$0xff]   ;;  %v1796_v30 = vld [vmem:[%s2418_s6 + $0x30] sm:$0xff]  }
 0x356   : > { %v1361_v50 = vmul.f32 %v1851_v46, %v2348_v47  ;;  %v1797_v46 = vld [vmem:[%s2418_s6 + $0x38] sm:$0xff]  }
 0x357   : > { %v2342_v8 = vadd.f32 %v1151_v32, %v1150_v63  ;;  %v1370_v43 = vmul.f32 %v1366_v49, %v1362_v53  ;;  %v1793_v32 = vld [vmem:[%s2418_s6 + $0x18] sm:$0xff]   ;;  %v1794_v63 = vld [vmem:[%s2418_s6 + $0x20] sm:$0xff]  }
 0x358   : > { %v1369_v59 = vmul.f32 %v1365_v55, %v1361_v50 }
 0x359   : > { %1854 = vtanh.f32 %v2342_v8  ;;  %v1381_v9 = vadd.f32 %v2357_v4, %v1370_v43 }
 0x35a   : > { %v1380_v11 = vadd.f32 %v2357_v4, %v1369_v59 }
 0x35c   : > { %v1384_v12 = vpack.c.bf16 %v1381_v9, %v1380_v11 }
 0x35e   : > { %v1853_v1 = vpop.eup %1852 }
 0x363   : > { %v1855_v5 = vpop.eup %1854 }
 0x364   : > { %v2360_v10 = vmul.f32 %v1855_v5, %v1853_v1 }
 0x366   : > { %1314 = vadd.xlane.f32.xlu1 %v2360_v10  ;;  %v1324_v42 = vmul.f32 %v2360_v10, %v2360_v10  ;;  %v1166_v3 = vpack.c.bf16 %v2360_v10, %v2360_v10 }
 0x368   : > { %1330 = vadd.xlane.f32.xlu0 %v1324_v42  ;;  %1200 = vmatmul.mubr.bf16.vlgmr.msra.gmra.mrb[12].mxu0 %v1166_v3 }
 0x369   : > { %1241 = vmatmul.mubr.bf16.vlgmr.msra.gmra.mrb[28].mxu1 %v1166_v3  ;;  %1720 = vmatprep.mubr.bf16.mxu0 %v1384_v12 }
 0x36a   : > { %1705 = vmatpush3.bf16.msra.mxu0 %v1790_v13 }
 0x36b   : > { %1706 = vmatprep.subr.bf16.mxu0 %v1791_v61 }
 0x36e   : > { %1707 = vmatpush3.bf16.msra.mxu0 %v1791_v61 }
 0x36f   : > { %1708 = vmatprep.subr.bf16.mxu0 %v1792_v54 }
 0x372   : > { %1709 = vmatpush3.bf16.msra.mxu0 %v1792_v54 }
 0x373   : > { %1710 = vmatprep.subr.bf16.mxu0 %v1793_v32 }
 0x376   : > { %1711 = vmatpush3.bf16.msra.mxu0 %v1793_v32 }
 0x377   : > { %1712 = vmatprep.subr.bf16.mxu0 %v1794_v63 }
 0x37a   : > { %1713 = vmatpush3.bf16.msra.mxu0 %v1794_v63 }
 0x3f3   : > { %v1315_v53 = vpop.xlane.xlu1 %1314 }
 0x3f4   : > { %v1320_v49 = vmul.f32 0.03125, %v1315_v53 }
 0x3f5   : > { %v1331_v50 = vpop.xlane.xlu0 %1330 }
 0x3f6   : > { %v1340_v55 = vmul.f32 %v1320_v49, %v1320_v49  ;;  %v1336_v43 = vmul.f32 0.03125, %v1331_v50 }
 0x3f8   : > { %v1344_v59 = vsub.f32 %v1336_v43, %v1340_v55 }
 0x3fa   : > { %v1349_v5 = vadd.f32 1e-05, %v1344_v59 }
 0x43b   : > { %v1201_v15 = vpop.f32.mrb[12].mxu0 }
 0x43c   : > { %v1249_v18 = vadd.f32 %v1201_v15, %v2433_v17  ;;  %v1242_v19 = vpop.f32.mrb[28].mxu1  ;;  %v1203_v20 = vpop.f32.mrb[13].mxu0 }
 0x43d   : > { %v1251_v22 = vadd.f32 %v1242_v19, %v2434_v21  ;;  %v1250_v24 = vadd.f32 %v1203_v20, %v2435_v23  ;;  %v1244_v25 = vpop.f32.mrb[29].mxu1  ;;  %v1205_v26 = vpop.f32.mrb[14].mxu0 }
 0x43e   : > { %v1670_v27 = vmul.f32 -1.442695, %v1249_v18  ;;  %v1252_v28 = vadd.f32 %v1244_v25, %v2244_v45  ;;  %v1246_v29 = vpop.f32.mrb[30].mxu1  ;;  %v1206_v31 = vpop.f32.mrb[15].mxu0  ;;  %v1367_v18 = vsub.f32 %v2360_v10, %v1320_v49 }
 0x43f   : > { %v1669_v33 = vmul.f32 -2.0, %v1251_v22  ;;  %v1671_v34 = vmul.f32 -1.442695, %v1250_v24  ;;  %v1247_v35 = vpop.f32.mrb[31].mxu1 }
 0x440   : > { %v1672_v40 = vmul.f32 -1.442695, %v1252_v28 }
 0x441   : > { %v1269_v36 = vmul.f32 1.442695, %v1669_v33  ;;  %1856 = vpow2.f32 %v1671_v34 }
 0x442   : > { %1858 = vpow2.f32 %v1670_v27  ;;  %v1679_v27 = vld [vmem:[%s2419_s7] ss:$0 sm:$0xff] }
 0x443   : > { %1860 = vpow2.f32 %v1269_v36 }
 0x44b   : > { %v1857_v37 = vpop.eup %1856 }
 0x44c   : > { %v1859_v38 = vpop.eup %1858  ;;  %v1274_v56 = vadd.f32 1.0, %v1857_v37 }
 0x44d   : > { %v1861_v39 = vpop.eup %1860  ;;  %v1273_v0 = vadd.f32 1.0, %v1859_v38 }
 0x44e   : > { %v1275_v41 = vadd.f32 1.0, %v1861_v39 }
 0x450   : > { %1862 = vrcp.f32 %v1275_v41 }
 0x451   : > { %1864 = vpow2.f32 %v1672_v40 }
 0x452   : > { %1866 = vrcp.f32 %v1274_v56 }
 0x453   : > { %1868 = vrcp.f32 %v1273_v0 }
 0x45a   : > { %v1863_v45 = vpop.eup %1862 }
 0x45b   : > { %v1865_v48 = vpop.eup %1864  ;;  %v1287_v60 = vmul.f32 2.0, %v1863_v45 }
 0x45c   : > { %v1867_v62 = vpop.eup %1866  ;;  %v1276_v2 = vadd.f32 1.0, %v1865_v48 }
 0x45d   : > { %v1675_v6 = vadd.f32 -1.0, %v1287_v60  ;;  %v1869_v7 = vpop.eup %1868  ;;  %v1298_v16 = vmul.f32 %v1867_v62, %v2342_v8  ;;  %v1795_v8 = vld [vmem:[%s2418_s6 + $0x28] sm:$0xff]  }
 0x45e   : > { %1870 = vrcp.f32 %v1276_v2  ;;  %1714 = vmatprep.subr.bf16.mxu0 %v1795_v8 }
 0x45f   : > { %v1299_v51 = vmul.f32 %v1869_v7, %v1675_v6  ;;  %1715 = vmatpush3.bf16.msra.mxu0 %v1795_v8 }
 0x460   : > { %1716 = vmatprep.subr.bf16.mxu0 %v1796_v30 }
 0x461   : > { %v1300_v52 = vadd.f32 %v1299_v51, %v1298_v16 }
 0x463   : > { %1303 = vst [vmem:[#allocation4] sm:$0xff] %v1300_v52  ;;  %1872 = vtanh.f32 %v1300_v52  ;;  %1717 = vmatpush3.bf16.msra.mxu0 %v1796_v30 }
 0x464   : > { %1718 = vmatprep.subr.bf16.mxu0 %v1797_v46  ;;  %1874 = vrsqrt.f32 %v1349_v5 }
 0x467   : > { %1719 = vmatpush3.bf16.msra.mxu0 %v1797_v46 }
 0x468   : > { %v1871_v58 = vpop.eup %1870 }
 0x46d   : > { %v1873_v14 = vpop.eup %1872 }
 0x46e   : > { %v1302_v57 = vmul.f32 %v1873_v14, %v1871_v58  ;;  %v1875_v15 = vpop.eup %1874 }
 0x46f   : > { %v1363_v17 = vmul.f32 %v1875_v15, %v2348_v47 }
 0x470   : > { %1316 = vadd.xlane.f32.xlu1 %v1302_v57  ;;  %1304 = vst [vmem:[#allocation3] sm:$0xff] %v1302_v57  ;;  %v1325_v44 = vmul.f32 %v1302_v57, %v1302_v57 }
 0x471   : > { %v1371_v22 = vmul.f32 %v1367_v18, %v1363_v17 }
 0x473   : > { %v1382_v24 = vadd.f32 %v2357_v4, %v1371_v22 }
 0x474   : > { %1332 = vadd.xlane.f32.xlu1 %v1325_v44 }
 0x4fd   : > { %v1317_v1 = vpop.xlane.xlu1 %1316 }
 0x4fe   : > { %v1321_v9 = vmul.f32 0.03125, %v1317_v1 }
 0x500   : > { %v1341_v42 = vmul.f32 %v1321_v9, %v1321_v9  ;;  %v1368_v20 = vsub.f32 %v1302_v57, %v1321_v9 }
 0x501   : > { %v1333_v11 = vpop.xlane.xlu1 %1332 }
 0x502   : > { %v1337_v3 = vmul.f32 0.03125, %v1333_v11 }
 0x504   : > { %v1345_v12 = vsub.f32 %v1337_v3, %v1341_v42 }
 0x506   : > { %v1350_v13 = vadd.f32 1e-05, %v1345_v12 }
 0x508   : > { %1876 = vrsqrt.f32 %v1350_v13 }
 0x512   : > { %v1877_v19 = vpop.eup %1876 }
 0x513   : > { %v1364_v21 = vmul.f32 %v1877_v19, %v2348_v47 }
 0x515   : > { %v1372_v23 = vmul.f32 %v1368_v20, %v1364_v21 }
 0x517   : > { %v1383_v25 = vadd.f32 %v2357_v4, %v1372_v23 }
 0x519   : > { %v1385_v26 = vpack.c.bf16 %v1383_v25, %v1382_v24 }
 0x51b   : > { %1721 = vmatmul.mubr.bf16.vlgmr.msra.gmra.mrb[16].mxu0 %v1385_v26 }
 0x5ee   : > { %v1722_v28 = vpop.f32.mrb[16].mxu0 }
 0x5ef   : > { %v1500_v29 = vadd.f32 %v1722_v28, %v1679_v27  ;;  %v1491_v31 = vpop.f32.mrb[17].mxu0 }
 0x5f0   : > { %v1492_v10 = vadd.f32 %v1679_v27, %v1491_v31  ;;  %v1723_v33 = vpop.f32.mrb[18].mxu0 }
 0x5f1   : > { %v1690_v34 = vmul.f32 -1.442695, %v1500_v29  ;;  %v1503_v35 = vadd.f32 %v1723_v33, %v1679_v27  ;;  %v1494_v47 = vpop.f32.mrb[19].mxu0 }
 0x5f2   : > { %v1688_v36 = vmul.f32 -1.442695, %v1492_v10  ;;  %v1495_v37 = vadd.f32 %v1679_v27, %v1494_v47 }
 0x5f3   : > { %1878 = vpow2.f32 %v1690_v34  ;;  %v1691_v38 = vmul.f32 -1.442695, %v1503_v35 }
 0x5f4   : > { %1880 = vpow2.f32 %v1688_v36  ;;  %v1689_v4 = vmul.f32 -1.442695, %v1495_v37 }
 0x5f5   : > { %1882 = vpow2.f32 %v1691_v38 }
 0x5f6   : > { %1884 = vpow2.f32 %v1689_v4 }
 0x5fd   : > { %v1879_v39 = vpop.eup %1878 }
 0x5fe   : > { %v1881_v40 = vpop.eup %1880  ;;  %v1520_v45 = vadd.f32 1.0, %v1879_v39 }
 0x5ff   : > { %v1883_v41 = vpop.eup %1882  ;;  %v1518_v56 = vadd.f32 1.0, %v1881_v40 }
 0x600   : > { %v1885_v0 = vpop.eup %1884  ;;  %v1521_v48 = vadd.f32 1.0, %v1883_v41 }
 0x601   : > { %1886 = vrcp.f32 %v1518_v56  ;;  %v1519_v60 = vadd.f32 1.0, %v1885_v0 }
 0x603   : > { %1888 = vrcp.f32 %v1519_v60 }
 0x604   : > { %1890 = vrcp.f32 %v1520_v45 }
 0x605   : > { %1892 = vrcp.f32 %v1521_v48 }
 0x60b   : > { %v1887_v62 = vpop.eup %1886 }
 0x60c   : > { %1530 = vst [vmem:[%s1965_s15] sm:$0xff] %v1887_v62 }
 0x60d   : > { %v1889_v6 = vpop.eup %1888 }
 0x60e   : > { %v1891_v7 = vpop.eup %1890  ;;  %1531 = vst [vmem:[%s1965_s15 + $0x8] sm:$0xff] %v1889_v6 }
 0x60f   : > { %v1893_v2 = vpop.eup %1892  ;;  %1532 = vst [vmem:[%s1965_s15 + $0x10] sm:$0xff] %v1891_v7 }
 0x610   : > { %1533 = vst [vmem:[%s1965_s15 + $0x18] sm:$0xff] %v1893_v2 }
 0x611 PF: > { %s18_s27 = sadd.s32 1, %s1900_s27  }
 0x612   : > { %p15_p5 = scmp.ge.s32.totalorder %s18_s27, 4  }
 0x614   :  { %17 = sbr.rel (!%p15_p5) target bundleno = 1 (0x1), region = 90 }

</bundles_post_ra>
